<compile_context>
chip_gen: v7x
topology: tpu7x:2x2x1
jax: 0.10.0
libtpu: 0.0.40
codegen_flags: <defaults>
</compile_context>

<pallas_src>
import functools

import jax
import jax.numpy as jnp
from jax.experimental import pallas as pl
from jax.experimental.pallas import tpu as pltpu

# ----------------------------- config (small, synthetic) --------------------
VOCAB = 64     # vocab size
B = 2          # batch
S = 8          # sequence length
H = 32         # hidden size
NH = 4         # attention heads
HD = H // NH   # head dim
FFN = 64       # intermediate (MLP) size
LAYERS = 2     # transformer layers per encoder
MAXPOS = 32    # max position embeddings
LN_EPS = 1e-12
NEG_INF = -1e9
SMALL_PAD = 128  # lane padding of the packed small-parameter block


def _layer_norm(x, g, b, eps=LN_EPS):
    mu = jnp.mean(x, axis=-1, keepdims=True)
    var = jnp.mean((x - mu) * (x - mu), axis=-1, keepdims=True)
    return (x - mu) * jax.lax.rsqrt(var + eps) * g + b


# ----------------------------- fused encoder kernel --------------------------
def dpr_encoder_kernel(x_ref, bias_ref,
                       wqkv_ref, wo_ref, w1_ref, w2_ref, small_ref,
                       out_ref,
                       *, num_heads, head_dim, hidden, ffn, num_layers):
    x = x_ref[0]          # (B*S, H) f32 activations, carried in vregs
    bias = bias_ref[0]    # (B*S, B*S) additive bias: block-diag + key mask
    bs = x.shape[0]

    # Static unroll over layers: no grid axis, no per-layer DMA re-issue,
    # activations never touch VMEM/HBM between layers.
    for layer in range(num_layers):
        wqkv = wqkv_ref[0, layer]    # (H, 3H) bf16, 1/sqrt(HD) folded into Q cols
        wo = wo_ref[0, layer]        # (H, H)  bf16
        w1 = w1_ref[0, layer]        # (H, FFN) bf16
        w2 = w2_ref[0, layer]        # (FFN, H) bf16
        small = small_ref[0, layer]  # (8, 128) f32: packed biases / LN params

        bqkv = small[0:1, :3 * hidden]
        bo = small[1:2, :hidden]
        b1 = small[2:3, :ffn]
        b2 = small[3:4, :hidden]
        ln1_g = small[4:5, :hidden]
        ln1_b = small[5:6, :hidden]
        ln2_g = small[6:7, :hidden]
        ln2_b = small[7:8, :hidden]

        # Fused QKV projection: one (BS, H) x (H, 3H) matmul, bf16 operands,
        # f32 accumulate.
        qkv = jnp.dot(x.astype(jnp.bfloat16), wqkv,
                      preferred_element_type=jnp.float32) + bqkv

        # Per-head scores (bf16 MXU operands), stacked along sublanes so the
        # softmax (max / exp / sum / normalize) runs ONCE for all heads.
        score_blocks = []
        for h in range(num_heads):
            qh = qkv[:, h * head_dim:(h + 1) * head_dim].astype(jnp.bfloat16)
            kh = qkv[:, hidden + h * head_dim:
                        hidden + (h + 1) * head_dim].astype(jnp.bfloat16)
            s = jax.lax.dot_general(
                qh, kh, (((1,), (1,)), ((), ())),
                preferred_element_type=jnp.float32) + bias
            score_blocks.append(s)
        scores = jnp.concatenate(score_blocks, axis=0)        # (NH*BS, BS) f32

        m = jnp.max(scores, axis=-1, keepdims=True)
        p = jnp.exp(scores - m)
        # Exact normalization for parity with the PyTorch softmax
        # (pl.reciprocal(..., approx=True) would be marginally cheaper).
        p = (p / jnp.sum(p, axis=-1, keepdims=True)).astype(jnp.bfloat16)

        # Per-head context, folded straight into the output projection as
        # partial-product accumulation (no lane concat, no VMEM scratch,
        # no masked partial stores).
        attn = None
        for h in range(num_heads):
            ph = p[h * bs:(h + 1) * bs, :]                              # (BS, BS)
            vh = qkv[:, 2 * hidden + h * head_dim:
                        2 * hidden + (h + 1) * head_dim].astype(jnp.bfloat16)
            ctx_h = jnp.dot(ph, vh, preferred_element_type=jnp.float32)  # (BS, HD)
            part = jnp.dot(ctx_h.astype(jnp.bfloat16),
                           wo[h * head_dim:(h + 1) * head_dim, :],
                           preferred_element_type=jnp.float32)           # (BS, H)
            attn = part if attn is None else attn + part
        attn = attn + bo

        h1 = _layer_norm(x + attn, ln1_g, ln1_b)

        # TODO(synk): HF BERT/DPR uses exact (erf) GELU; tanh approximation
        # kept for guaranteed Mosaic lowering of the transcendental.
        f = jnp.dot(h1.astype(jnp.bfloat16), w1,
                    preferred_element_type=jnp.float32) + b1
        f = jax.nn.gelu(f, approximate=True)
        f = jnp.dot(f.astype(jnp.bfloat16), w2,
                    preferred_element_type=jnp.float32) + b2
        x = _layer_norm(h1 + f, ln2_g, ln2_b)

    out_ref[0] = x.astype(out_ref.dtype)


def run_dpr_encoders(x_emb, mask_bias, stacked):
    """x_emb: (E, B*S, H) f32, mask_bias: (E, B*S, B*S) f32,
    stacked: dict of (E, L, ...) weight arrays (wqkv, wo, w1, w2, small)."""
    n_enc, bs, hh = x_emb.shape
    n_layers = stacked["wqkv"].shape[1]
    ffn = stacked["w1"].shape[-1]

    weights = [stacked["wqkv"], stacked["wo"], stacked["w1"],
               stacked["w2"], stacked["small"]]
    # All weights are (E, L, d1, d2): stream the full per-encoder stack once.
    w_specs = [pl.BlockSpec((1,) + w.shape[1:], lambda e: (e, 0, 0, 0))
               for w in weights]

    kernel = functools.partial(dpr_encoder_kernel, num_heads=NH, head_dim=HD,
                               hidden=hh, ffn=ffn, num_layers=n_layers)

    # TODO(synk): on v7x (2 TensorCores/chip) the two independent encoders
    # could be split across cores via pltpu.CORE_PARALLEL / pl.core_map; plain
    # "parallel" is a safe no-op on single-core v5e/v6e.
    return pl.pallas_call(
        kernel,
        out_shape=jax.ShapeDtypeStruct((n_enc, bs, hh), jnp.float32),
        grid=(n_enc,),
        in_specs=[pl.BlockSpec((1, bs, hh), lambda e: (e, 0, 0)),
                  pl.BlockSpec((1, bs, bs), lambda e: (e, 0, 0))] + w_specs,
        out_specs=pl.BlockSpec((1, bs, hh), lambda e: (e, 0, 0)),
        compiler_params=pltpu.CompilerParams(
            dimension_semantics=("parallel",)),
    )(x_emb, mask_bias, *weights)


# ----------------------------- parameter init (deterministic) ---------------
def init_encoder_params(key):
    std = 0.02
    k_emb, k_w = jax.random.split(key)
    ke = jax.random.split(k_emb, 3)
    kw = jax.random.split(k_w, 6 * LAYERS)

    def rn(k, shape):
        return jax.random.normal(k, shape, jnp.float32) * std

    wq = jnp.stack([rn(kw[l * 6 + 0], (H, H)) for l in range(LAYERS)])
    wk = jnp.stack([rn(kw[l * 6 + 1], (H, H)) for l in range(LAYERS)])
    wv = jnp.stack([rn(kw[l * 6 + 2], (H, H)) for l in range(LAYERS)])
    wo = jnp.stack([rn(kw[l * 6 + 3], (H, H)) for l in range(LAYERS)])
    w1 = jnp.stack([rn(kw[l * 6 + 4], (H, FFN)) for l in range(LAYERS)])
    w2 = jnp.stack([rn(kw[l * 6 + 5], (FFN, H)) for l in range(LAYERS)])

    # Fold the 1/sqrt(head_dim) attention scale into the Q projection
    # (the Q bias would need the same fold; it is zero here).
    scale = 1.0 / (HD ** 0.5)
    wqkv = jnp.concatenate([wq * scale, wk, wv], axis=-1)    # (L, H, 3H)

    bqkv = jnp.zeros((LAYERS, 3 * H), jnp.float32)
    bo = jnp.zeros((LAYERS, H), jnp.float32)
    b1 = jnp.zeros((LAYERS, FFN), jnp.float32)
    b2 = jnp.zeros((LAYERS, H), jnp.float32)
    ln1_g = jnp.ones((LAYERS, H), jnp.float32)
    ln1_b = jnp.zeros((LAYERS, H), jnp.float32)
    ln2_g = jnp.ones((LAYERS, H), jnp.float32)
    ln2_b = jnp.zeros((LAYERS, H), jnp.float32)

    # Pack the 8 small per-layer vectors into one (L, 8, 128) block: one DMA
    # stream instead of eight.
    small = jnp.zeros((LAYERS, 8, SMALL_PAD), jnp.float32)
    for i, v in enumerate([bqkv, bo, b1, b2, ln1_g, ln1_b, ln2_g, ln2_b]):
        small = small.at[:, i, :v.shape[-1]].set(v)

    return {
        "word_emb": rn(ke[0], (VOCAB, H)),
        "pos_emb": rn(ke[1], (MAXPOS, H)),
        "type_emb": rn(ke[2], (2, H)),
        "emb_ln_g": jnp.ones((1, H), jnp.float32),
        "emb_ln_b": jnp.zeros((1, H), jnp.float32),
        "layers": {
            # matmul operands in bf16 (MXU-native on all generations);
            # biases / LayerNorm params stay f32.
            "wqkv": wqkv.astype(jnp.bfloat16),
            "wo": wo.astype(jnp.bfloat16),
            "w1": w1.astype(jnp.bfloat16),
            "w2": w2.astype(jnp.bfloat16),
            "small": small,
        },
    }


# ----------------------------- encoder / combined forward -------------------
def embed(input_ids, params):
    bb, ss = input_ids.shape
    # Embedding gathers + embedding LayerNorm: plain-JAX glue.
    # TODO(synk): token_type_ids hard-coded to 0 (matches the synthetic setup).
    emb = (params["word_emb"][input_ids]
           + params["pos_emb"][:ss][None, :, :]
           + params["type_emb"][0][None, None, :])
    x = _layer_norm(emb, params["emb_ln_g"][None], params["emb_ln_b"][None])
    return x.reshape(bb * ss, -1)


def build_attn_bias(attention_mask):
    """(B, S) 0/1 mask -> (B*S, B*S) additive bias that is block-diagonal over
    the batch (so the batch can be folded into the sublane axis) and masks
    padded key positions."""
    bb, ss = attention_mask.shape
    seg = jnp.repeat(jnp.arange(bb), ss)                   # (B*S,)
    same_example = seg[:, None] == seg[None, :]
    key_valid = attention_mask.reshape(-1) > 0
    allowed = same_example & key_valid[None, :]
    return jnp.where(allowed, 0.0, NEG_INF).astype(jnp.float32)


def dpr_combined_forward(question_input_ids, question_attention_mask,
                         context_input_ids, context_attention_mask,
                         q_params, c_params):
    bb, ss = question_input_ids.shape

    x_emb = jnp.stack([embed(question_input_ids, q_params),
                       embed(context_input_ids, c_params)], axis=0)
    mask_bias = jnp.stack([build_attn_bias(question_attention_mask),
                           build_attn_bias(context_attention_mask)], axis=0)
    stacked = {k: jnp.stack([q_params["layers"][k], c_params["layers"][k]],
                            axis=0)
               for k in q_params["layers"]}

    hidden = run_dpr_encoders(x_emb, mask_bias, stacked)   # (2, B*S, H)
    hidden = hidden.reshape(2, bb, ss, -1)

    # DPR pooler_output (projection_dim == 0) == CLS hidden state.
    question_outputs = hidden[0, :, 0, :]
    context_outputs = hidden[1, :, 0, :]
    return question_outputs, context_outputs


# ----------------------------- main ------------------------------------------
if __name__ == "__main__":
    root = jax.random.PRNGKey(0)
    kq, kc, kdata = jax.random.split(root, 3)

    q_params = init_encoder_params(kq)
    c_params = init_encoder_params(kc)

    k1, k2 = jax.random.split(kdata)
    question_input_ids = jax.random.randint(k1, (B, S), 0, VOCAB, dtype=jnp.int32)
    context_input_ids = jax.random.randint(k2, (B, S), 0, VOCAB, dtype=jnp.int32)
    question_attention_mask = jnp.ones((B, S), jnp.int32)
    context_attention_mask = jnp.ones((B, S), jnp.int32).at[:, S - 2:].set(0)

    fwd = jax.jit(dpr_combined_forward)
    q_out, c_out = fwd(question_input_ids, question_attention_mask,
                       context_input_ids, context_attention_mask,
                       q_params, c_params)

    jax.block_until_ready((q_out, c_out))
    assert q_out.shape == (B, H) and c_out.shape == (B, H)
    print("KERNEL_OK")
</pallas_src>

<mosaic_0001>
module attributes {stable_mosaic.version = 11 : i64} {
  func.func @dpr_encoder_kernel(%arg0: i32, %arg1: memref<1x16x32xf32, #tpu.memory_space<vmem>>, %arg2: memref<1x16x16xf32, #tpu.memory_space<vmem>>, %arg3: memref<1x2x32x96xbf16, #tpu.memory_space<vmem>>, %arg4: memref<1x2x32x32xbf16, #tpu.memory_space<vmem>>, %arg5: memref<1x2x32x64xbf16, #tpu.memory_space<vmem>>, %arg6: memref<1x2x64x32xbf16, #tpu.memory_space<vmem>>, %arg7: memref<1x2x8x128xf32, #tpu.memory_space<vmem>>, %arg8: memref<1x16x32xf32, #tpu.memory_space<vmem>>) attributes {dimension_semantics = [#tpu.dimension_semantics<parallel>], iteration_bounds = array<i64: 2>, scalar_prefetch = 0 : i64, scratch_operands = 0 : i64, tpu.core_type = #tpu.core_type<tc>, window_params = [{transform_indices = @transform_0, window_bounds = array<i64: 1, 16, 32>}, {transform_indices = @transform_1, window_bounds = array<i64: 1, 16, 16>}, {transform_indices = @transform_2, window_bounds = array<i64: 1, 2, 32, 96>}, {transform_indices = @transform_3, window_bounds = array<i64: 1, 2, 32, 32>}, {transform_indices = @transform_4, window_bounds = array<i64: 1, 2, 32, 64>}, {transform_indices = @transform_5, window_bounds = array<i64: 1, 2, 64, 32>}, {transform_indices = @transform_6, window_bounds = array<i64: 1, 2, 8, 128>}, {transform_indices = @transform_7, window_bounds = array<i64: 1, 16, 32>}]} {
    %c0 = arith.constant 0 : index
    %c0_0 = arith.constant 0 : index
    %c0_1 = arith.constant 0 : index
    %0 = vector.load %arg1[%c0, %c0_0, %c0_1] : memref<1x16x32xf32, #tpu.memory_space<vmem>>, vector<1x16x32xf32>
    %1 = vector.shape_cast %0 : vector<1x16x32xf32> to vector<16x32xf32>
    %c0_2 = arith.constant 0 : index
    %c0_3 = arith.constant 0 : index
    %c0_4 = arith.constant 0 : index
    %2 = vector.load %arg2[%c0_2, %c0_3, %c0_4] : memref<1x16x16xf32, #tpu.memory_space<vmem>>, vector<1x16x16xf32>
    %3 = vector.shape_cast %2 : vector<1x16x16xf32> to vector<16x16xf32>
    %c0_5 = arith.constant 0 : index
    %c0_6 = arith.constant 0 : index
    %c0_7 = arith.constant 0 : index
    %c0_8 = arith.constant 0 : index
    %4 = vector.load %arg3[%c0_5, %c0_6, %c0_7, %c0_8] : memref<1x2x32x96xbf16, #tpu.memory_space<vmem>>, vector<1x1x32x96xbf16>
    %5 = vector.shape_cast %4 : vector<1x1x32x96xbf16> to vector<32x96xbf16>
    %c0_9 = arith.constant 0 : index
    %c0_10 = arith.constant 0 : index
    %c0_11 = arith.constant 0 : index
    %c0_12 = arith.constant 0 : index
    %6 = vector.load %arg4[%c0_9, %c0_10, %c0_11, %c0_12] : memref<1x2x32x32xbf16, #tpu.memory_space<vmem>>, vector<1x1x32x32xbf16>
    %7 = vector.shape_cast %6 : vector<1x1x32x32xbf16> to vector<32x32xbf16>
    %c0_13 = arith.constant 0 : index
    %c0_14 = arith.constant 0 : index
    %c0_15 = arith.constant 0 : index
    %c0_16 = arith.constant 0 : index
    %8 = vector.load %arg5[%c0_13, %c0_14, %c0_15, %c0_16] : memref<1x2x32x64xbf16, #tpu.memory_space<vmem>>, vector<1x1x32x64xbf16>
    %9 = vector.shape_cast %8 : vector<1x1x32x64xbf16> to vector<32x64xbf16>
    %c0_17 = arith.constant 0 : index
    %c0_18 = arith.constant 0 : index
    %c0_19 = arith.constant 0 : index
    %c0_20 = arith.constant 0 : index
    %10 = vector.load %arg6[%c0_17, %c0_18, %c0_19, %c0_20] : memref<1x2x64x32xbf16, #tpu.memory_space<vmem>>, vector<1x1x64x32xbf16>
    %11 = vector.shape_cast %10 : vector<1x1x64x32xbf16> to vector<64x32xbf16>
    %c0_21 = arith.constant 0 : index
    %c0_22 = arith.constant 0 : index
    %c0_23 = arith.constant 0 : index
    %c0_24 = arith.constant 0 : index
    %12 = vector.load %arg7[%c0_21, %c0_22, %c0_23, %c0_24] : memref<1x2x8x128xf32, #tpu.memory_space<vmem>>, vector<1x1x8x128xf32>
    %13 = vector.shape_cast %12 : vector<1x1x8x128xf32> to vector<8x128xf32>
    %14 = vector.extract_strided_slice %13 {offsets = [0, 0], sizes = [1, 96], strides = [1, 1]} : vector<8x128xf32> to vector<1x96xf32>
    %15 = vector.extract_strided_slice %13 {offsets = [1, 0], sizes = [1, 32], strides = [1, 1]} : vector<8x128xf32> to vector<1x32xf32>
    %16 = vector.extract_strided_slice %13 {offsets = [2, 0], sizes = [1, 64], strides = [1, 1]} : vector<8x128xf32> to vector<1x64xf32>
    %17 = vector.extract_strided_slice %13 {offsets = [3, 0], sizes = [1, 32], strides = [1, 1]} : vector<8x128xf32> to vector<1x32xf32>
    %18 = vector.extract_strided_slice %13 {offsets = [4, 0], sizes = [1, 32], strides = [1, 1]} : vector<8x128xf32> to vector<1x32xf32>
    %19 = vector.extract_strided_slice %13 {offsets = [5, 0], sizes = [1, 32], strides = [1, 1]} : vector<8x128xf32> to vector<1x32xf32>
    %20 = vector.extract_strided_slice %13 {offsets = [6, 0], sizes = [1, 32], strides = [1, 1]} : vector<8x128xf32> to vector<1x32xf32>
    %21 = vector.extract_strided_slice %13 {offsets = [7, 0], sizes = [1, 32], strides = [1, 1]} : vector<8x128xf32> to vector<1x32xf32>
    %22 = arith.truncf %1 : vector<16x32xf32> to vector<16x32xbf16>
    %cst = arith.constant dense<0.000000e+00> : vector<16x96xf32>
    %23 = tpu.matmul %22, %5, %cst {dimension_numbers = #tpu.dot_dimension_numbers<[1], [0], [0], [1], [0, 0, 1, 1], [], []>} : vector<16x32xbf16>, vector<32x96xbf16>, vector<16x96xf32> -> vector<16x96xf32>
    %24 = vector.broadcast %14 : vector<1x96xf32> to vector<16x96xf32>
    %25 = arith.addf %23, %24 : vector<16x96xf32>
    %26 = vector.extract_strided_slice %25 {offsets = [0, 0], sizes = [16, 8], strides = [1, 1]} : vector<16x96xf32> to vector<16x8xf32>
    %27 = arith.truncf %26 : vector<16x8xf32> to vector<16x8xbf16>
    %28 = vector.extract_strided_slice %25 {offsets = [0, 32], sizes = [16, 8], strides = [1, 1]} : vector<16x96xf32> to vector<16x8xf32>
    %29 = arith.truncf %28 : vector<16x8xf32> to vector<16x8xbf16>
    %cst_25 = arith.constant dense<0.000000e+00> : vector<16x16xf32>
    %30 = tpu.matmul %27, %29, %cst_25 {dimension_numbers = #tpu.dot_dimension_numbers<[1], [1], [0], [0], [0, 0, 1, 0], [], []>} : vector<16x8xbf16>, vector<16x8xbf16>, vector<16x16xf32> -> vector<16x16xf32>
    %31 = arith.addf %30, %3 : vector<16x16xf32>
    %32 = vector.extract_strided_slice %25 {offsets = [0, 8], sizes = [16, 8], strides = [1, 1]} : vector<16x96xf32> to vector<16x8xf32>
    %33 = arith.truncf %32 : vector<16x8xf32> to vector<16x8xbf16>
    %34 = vector.extract_strided_slice %25 {offsets = [0, 40], sizes = [16, 8], strides = [1, 1]} : vector<16x96xf32> to vector<16x8xf32>
    %35 = arith.truncf %34 : vector<16x8xf32> to vector<16x8xbf16>
    %cst_26 = arith.constant dense<0.000000e+00> : vector<16x16xf32>
    %36 = tpu.matmul %33, %35, %cst_26 {dimension_numbers = #tpu.dot_dimension_numbers<[1], [1], [0], [0], [0, 0, 1, 0], [], []>} : vector<16x8xbf16>, vector<16x8xbf16>, vector<16x16xf32> -> vector<16x16xf32>
    %37 = arith.addf %36, %3 : vector<16x16xf32>
    %38 = vector.extract_strided_slice %25 {offsets = [0, 16], sizes = [16, 8], strides = [1, 1]} : vector<16x96xf32> to vector<16x8xf32>
    %39 = arith.truncf %38 : vector<16x8xf32> to vector<16x8xbf16>
    %40 = vector.extract_strided_slice %25 {offsets = [0, 48], sizes = [16, 8], strides = [1, 1]} : vector<16x96xf32> to vector<16x8xf32>
    %41 = arith.truncf %40 : vector<16x8xf32> to vector<16x8xbf16>
    %cst_27 = arith.constant dense<0.000000e+00> : vector<16x16xf32>
    %42 = tpu.matmul %39, %41, %cst_27 {dimension_numbers = #tpu.dot_dimension_numbers<[1], [1], [0], [0], [0, 0, 1, 0], [], []>} : vector<16x8xbf16>, vector<16x8xbf16>, vector<16x16xf32> -> vector<16x16xf32>
    %43 = arith.addf %42, %3 : vector<16x16xf32>
    %44 = vector.extract_strided_slice %25 {offsets = [0, 24], sizes = [16, 8], strides = [1, 1]} : vector<16x96xf32> to vector<16x8xf32>
    %45 = arith.truncf %44 : vector<16x8xf32> to vector<16x8xbf16>
    %46 = vector.extract_strided_slice %25 {offsets = [0, 56], sizes = [16, 8], strides = [1, 1]} : vector<16x96xf32> to vector<16x8xf32>
    %47 = arith.truncf %46 : vector<16x8xf32> to vector<16x8xbf16>
    %cst_28 = arith.constant dense<0.000000e+00> : vector<16x16xf32>
    %48 = tpu.matmul %45, %47, %cst_28 {dimension_numbers = #tpu.dot_dimension_numbers<[1], [1], [0], [0], [0, 0, 1, 0], [], []>} : vector<16x8xbf16>, vector<16x8xbf16>, vector<16x16xf32> -> vector<16x16xf32>
    %49 = arith.addf %48, %3 : vector<16x16xf32>
    %50 = tpu.concatenate %31, %37, %43, %49 in 0 : vector<16x16xf32>, vector<16x16xf32>, vector<16x16xf32>, vector<16x16xf32> -> vector<64x16xf32>
    %cst_29 = arith.constant dense<0xFF800000> : vector<64xf32>
    %51 = vector.multi_reduction <maximumf>, %50, %cst_29 [1] : vector<64x16xf32> to vector<64xf32>
    %52 = vector.shape_cast %51 : vector<64xf32> to vector<64x1xf32>
    %53 = vector.broadcast %52 : vector<64x1xf32> to vector<64x16xf32>
    %54 = arith.subf %50, %53 : vector<64x16xf32>
    %55 = math.exp %54 : vector<64x16xf32>
    %cst_30 = arith.constant dense<0.000000e+00> : vector<64xf32>
    %56 = vector.multi_reduction <add>, %55, %cst_30 [1] : vector<64x16xf32> to vector<64xf32>
    %57 = vector.shape_cast %56 : vector<64xf32> to vector<64x1xf32>
    %58 = vector.broadcast %57 : vector<64x1xf32> to vector<64x16xf32>
    %59 = arith.divf %55, %58 : vector<64x16xf32>
    %60 = arith.truncf %59 : vector<64x16xf32> to vector<64x16xbf16>
    %61 = vector.extract_strided_slice %60 {offsets = [0, 0], sizes = [16, 16], strides = [1, 1]} : vector<64x16xbf16> to vector<16x16xbf16>
    %62 = vector.extract_strided_slice %25 {offsets = [0, 64], sizes = [16, 8], strides = [1, 1]} : vector<16x96xf32> to vector<16x8xf32>
    %63 = arith.truncf %62 : vector<16x8xf32> to vector<16x8xbf16>
    %cst_31 = arith.constant dense<0.000000e+00> : vector<16x8xf32>
    %64 = tpu.matmul %61, %63, %cst_31 {dimension_numbers = #tpu.dot_dimension_numbers<[1], [0], [0], [1], [0, 0, 1, 1], [], []>} : vector<16x16xbf16>, vector<16x8xbf16>, vector<16x8xf32> -> vector<16x8xf32>
    %65 = arith.truncf %64 : vector<16x8xf32> to vector<16x8xbf16>
    %66 = vector.extract_strided_slice %7 {offsets = [0, 0], sizes = [8, 32], strides = [1, 1]} : vector<32x32xbf16> to vector<8x32xbf16>
    %cst_32 = arith.constant dense<0.000000e+00> : vector<16x32xf32>
    %67 = tpu.matmul %65, %66, %cst_32 {dimension_numbers = #tpu.dot_dimension_numbers<[1], [0], [0], [1], [0, 0, 1, 1], [], []>} : vector<16x8xbf16>, vector<8x32xbf16>, vector<16x32xf32> -> vector<16x32xf32>
    %68 = vector.extract_strided_slice %60 {offsets = [16, 0], sizes = [16, 16], strides = [1, 1]} : vector<64x16xbf16> to vector<16x16xbf16>
    %69 = vector.extract_strided_slice %25 {offsets = [0, 72], sizes = [16, 8], strides = [1, 1]} : vector<16x96xf32> to vector<16x8xf32>
    %70 = arith.truncf %69 : vector<16x8xf32> to vector<16x8xbf16>
    %cst_33 = arith.constant dense<0.000000e+00> : vector<16x8xf32>
    %71 = tpu.matmul %68, %70, %cst_33 {dimension_numbers = #tpu.dot_dimension_numbers<[1], [0], [0], [1], [0, 0, 1, 1], [], []>} : vector<16x16xbf16>, vector<16x8xbf16>, vector<16x8xf32> -> vector<16x8xf32>
    %72 = arith.truncf %71 : vector<16x8xf32> to vector<16x8xbf16>
    %73 = vector.extract_strided_slice %7 {offsets = [8, 0], sizes = [8, 32], strides = [1, 1]} : vector<32x32xbf16> to vector<8x32xbf16>
    %cst_34 = arith.constant dense<0.000000e+00> : vector<16x32xf32>
    %74 = tpu.matmul %72, %73, %cst_34 {dimension_numbers = #tpu.dot_dimension_numbers<[1], [0], [0], [1], [0, 0, 1, 1], [], []>} : vector<16x8xbf16>, vector<8x32xbf16>, vector<16x32xf32> -> vector<16x32xf32>
    %75 = arith.addf %67, %74 : vector<16x32xf32>
    %76 = vector.extract_strided_slice %60 {offsets = [32, 0], sizes = [16, 16], strides = [1, 1]} : vector<64x16xbf16> to vector<16x16xbf16>
    %77 = vector.extract_strided_slice %25 {offsets = [0, 80], sizes = [16, 8], strides = [1, 1]} : vector<16x96xf32> to vector<16x8xf32>
    %78 = arith.truncf %77 : vector<16x8xf32> to vector<16x8xbf16>
    %cst_35 = arith.constant dense<0.000000e+00> : vector<16x8xf32>
    %79 = tpu.matmul %76, %78, %cst_35 {dimension_numbers = #tpu.dot_dimension_numbers<[1], [0], [0], [1], [0, 0, 1, 1], [], []>} : vector<16x16xbf16>, vector<16x8xbf16>, vector<16x8xf32> -> vector<16x8xf32>
    %80 = arith.truncf %79 : vector<16x8xf32> to vector<16x8xbf16>
    %81 = vector.extract_strided_slice %7 {offsets = [16, 0], sizes = [8, 32], strides = [1, 1]} : vector<32x32xbf16> to vector<8x32xbf16>
    %cst_36 = arith.constant dense<0.000000e+00> : vector<16x32xf32>
    %82 = tpu.matmul %80, %81, %cst_36 {dimension_numbers = #tpu.dot_dimension_numbers<[1], [0], [0], [1], [0, 0, 1, 1], [], []>} : vector<16x8xbf16>, vector<8x32xbf16>, vector<16x32xf32> -> vector<16x32xf32>
    %83 = arith.addf %75, %82 : vector<16x32xf32>
    %84 = vector.extract_strided_slice %60 {offsets = [48, 0], sizes = [16, 16], strides = [1, 1]} : vector<64x16xbf16> to vector<16x16xbf16>
    %85 = vector.extract_strided_slice %25 {offsets = [0, 88], sizes = [16, 8], strides = [1, 1]} : vector<16x96xf32> to vector<16x8xf32>
    %86 = arith.truncf %85 : vector<16x8xf32> to vector<16x8xbf16>
    %cst_37 = arith.constant dense<0.000000e+00> : vector<16x8xf32>
    %87 = tpu.matmul %84, %86, %cst_37 {dimension_numbers = #tpu.dot_dimension_numbers<[1], [0], [0], [1], [0, 0, 1, 1], [], []>} : vector<16x16xbf16>, vector<16x8xbf16>, vector<16x8xf32> -> vector<16x8xf32>
    %88 = arith.truncf %87 : vector<16x8xf32> to vector<16x8xbf16>
    %89 = vector.extract_strided_slice %7 {offsets = [24, 0], sizes = [8, 32], strides = [1, 1]} : vector<32x32xbf16> to vector<8x32xbf16>
    %cst_38 = arith.constant dense<0.000000e+00> : vector<16x32xf32>
    %90 = tpu.matmul %88, %89, %cst_38 {dimension_numbers = #tpu.dot_dimension_numbers<[1], [0], [0], [1], [0, 0, 1, 1], [], []>} : vector<16x8xbf16>, vector<8x32xbf16>, vector<16x32xf32> -> vector<16x32xf32>
    %91 = arith.addf %83, %90 : vector<16x32xf32>
    %92 = vector.broadcast %15 : vector<1x32xf32> to vector<16x32xf32>
    %93 = arith.addf %91, %92 : vector<16x32xf32>
    %94 = arith.addf %1, %93 : vector<16x32xf32>
    %cst_39 = arith.constant dense<0.000000e+00> : vector<16xf32>
    %95 = vector.multi_reduction <add>, %94, %cst_39 [1] : vector<16x32xf32> to vector<16xf32>
    %96 = vector.shape_cast %95 : vector<16xf32> to vector<16x1xf32>
    %cst_40 = arith.constant 3.200000e+01 : f32
    %97 = vector.broadcast %cst_40 : f32 to vector<16x1xf32>
    %98 = arith.divf %96, %97 : vector<16x1xf32>
    %99 = vector.broadcast %98 : vector<16x1xf32> to vector<16x32xf32>
    %100 = arith.subf %94, %99 : vector<16x32xf32>
    %101 = vector.broadcast %98 : vector<16x1xf32> to vector<16x32xf32>
    %102 = arith.subf %94, %101 : vector<16x32xf32>
    %103 = arith.mulf %100, %102 : vector<16x32xf32>
    %cst_41 = arith.constant dense<0.000000e+00> : vector<16xf32>
    %104 = vector.multi_reduction <add>, %103, %cst_41 [1] : vector<16x32xf32> to vector<16xf32>
    %105 = vector.shape_cast %104 : vector<16xf32> to vector<16x1xf32>
    %cst_42 = arith.constant 3.200000e+01 : f32
    %106 = vector.broadcast %cst_42 : f32 to vector<16x1xf32>
    %107 = arith.divf %105, %106 : vector<16x1xf32>
    %108 = vector.broadcast %98 : vector<16x1xf32> to vector<16x32xf32>
    %109 = arith.subf %94, %108 : vector<16x32xf32>
    %cst_43 = arith.constant 9.99999996E-13 : f32
    %110 = vector.broadcast %cst_43 : f32 to vector<16x1xf32>
    %111 = arith.addf %107, %110 : vector<16x1xf32>
    %112 = math.rsqrt %111 : vector<16x1xf32>
    %113 = vector.broadcast %112 : vector<16x1xf32> to vector<16x32xf32>
    %114 = arith.mulf %109, %113 : vector<16x32xf32>
    %115 = vector.broadcast %18 : vector<1x32xf32> to vector<16x32xf32>
    %116 = arith.mulf %114, %115 : vector<16x32xf32>
    %117 = vector.broadcast %19 : vector<1x32xf32> to vector<16x32xf32>
    %118 = arith.addf %116, %117 : vector<16x32xf32>
    %119 = arith.truncf %118 : vector<16x32xf32> to vector<16x32xbf16>
    %cst_44 = arith.constant dense<0.000000e+00> : vector<16x64xf32>
    %120 = tpu.matmul %119, %9, %cst_44 {dimension_numbers = #tpu.dot_dimension_numbers<[1], [0], [0], [1], [0, 0, 1, 1], [], []>} : vector<16x32xbf16>, vector<32x64xbf16>, vector<16x64xf32> -> vector<16x64xf32>
    %121 = vector.broadcast %16 : vector<1x64xf32> to vector<16x64xf32>
    %122 = arith.addf %120, %121 : vector<16x64xf32>
    %123 = arith.mulf %122, %122 : vector<16x64xf32>
    %124 = arith.mulf %122, %123 : vector<16x64xf32>
    %cst_45 = arith.constant 4.471500e-02 : f32
    %125 = vector.broadcast %cst_45 : f32 to vector<16x64xf32>
    %126 = arith.mulf %125, %124 : vector<16x64xf32>
    %127 = arith.addf %122, %126 : vector<16x64xf32>
    %cst_46 = arith.constant 0.797884583 : f32
    %128 = vector.broadcast %cst_46 : f32 to vector<16x64xf32>
    %129 = arith.mulf %128, %127 : vector<16x64xf32>
    %130 = math.tanh %129 : vector<16x64xf32>
    %cst_47 = arith.constant 1.000000e+00 : f32
    %131 = vector.broadcast %cst_47 : f32 to vector<16x64xf32>
    %132 = arith.addf %131, %130 : vector<16x64xf32>
    %cst_48 = arith.constant 5.000000e-01 : f32
    %133 = vector.broadcast %cst_48 : f32 to vector<16x64xf32>
    %134 = arith.mulf %133, %132 : vector<16x64xf32>
    %135 = arith.mulf %122, %134 : vector<16x64xf32>
    %136 = arith.truncf %135 : vector<16x64xf32> to vector<16x64xbf16>
    %cst_49 = arith.constant dense<0.000000e+00> : vector<16x32xf32>
    %137 = tpu.matmul %136, %11, %cst_49 {dimension_numbers = #tpu.dot_dimension_numbers<[1], [0], [0], [1], [0, 0, 1, 1], [], []>} : vector<16x64xbf16>, vector<64x32xbf16>, vector<16x32xf32> -> vector<16x32xf32>
    %138 = vector.broadcast %17 : vector<1x32xf32> to vector<16x32xf32>
    %139 = arith.addf %137, %138 : vector<16x32xf32>
    %140 = arith.addf %118, %139 : vector<16x32xf32>
    %cst_50 = arith.constant dense<0.000000e+00> : vector<16xf32>
    %141 = vector.multi_reduction <add>, %140, %cst_50 [1] : vector<16x32xf32> to vector<16xf32>
    %142 = vector.shape_cast %141 : vector<16xf32> to vector<16x1xf32>
    %cst_51 = arith.constant 3.200000e+01 : f32
    %143 = vector.broadcast %cst_51 : f32 to vector<16x1xf32>
    %144 = arith.divf %142, %143 : vector<16x1xf32>
    %145 = vector.broadcast %144 : vector<16x1xf32> to vector<16x32xf32>
    %146 = arith.subf %140, %145 : vector<16x32xf32>
    %147 = vector.broadcast %144 : vector<16x1xf32> to vector<16x32xf32>
    %148 = arith.subf %140, %147 : vector<16x32xf32>
    %149 = arith.mulf %146, %148 : vector<16x32xf32>
    %cst_52 = arith.constant dense<0.000000e+00> : vector<16xf32>
    %150 = vector.multi_reduction <add>, %149, %cst_52 [1] : vector<16x32xf32> to vector<16xf32>
    %151 = vector.shape_cast %150 : vector<16xf32> to vector<16x1xf32>
    %cst_53 = arith.constant 3.200000e+01 : f32
    %152 = vector.broadcast %cst_53 : f32 to vector<16x1xf32>
    %153 = arith.divf %151, %152 : vector<16x1xf32>
    %154 = vector.broadcast %144 : vector<16x1xf32> to vector<16x32xf32>
    %155 = arith.subf %140, %154 : vector<16x32xf32>
    %cst_54 = arith.constant 9.99999996E-13 : f32
    %156 = vector.broadcast %cst_54 : f32 to vector<16x1xf32>
    %157 = arith.addf %153, %156 : vector<16x1xf32>
    %158 = math.rsqrt %157 : vector<16x1xf32>
    %159 = vector.broadcast %158 : vector<16x1xf32> to vector<16x32xf32>
    %160 = arith.mulf %155, %159 : vector<16x32xf32>
    %161 = vector.broadcast %20 : vector<1x32xf32> to vector<16x32xf32>
    %162 = arith.mulf %160, %161 : vector<16x32xf32>
    %163 = vector.broadcast %21 : vector<1x32xf32> to vector<16x32xf32>
    %164 = arith.addf %162, %163 : vector<16x32xf32>
    %c0_55 = arith.constant 0 : index
    %c1 = arith.constant 1 : index
    %c0_56 = arith.constant 0 : index
    %c0_57 = arith.constant 0 : index
    %165 = vector.load %arg3[%c0_55, %c1, %c0_56, %c0_57] : memref<1x2x32x96xbf16, #tpu.memory_space<vmem>>, vector<1x1x32x96xbf16>
    %166 = vector.shape_cast %165 : vector<1x1x32x96xbf16> to vector<32x96xbf16>
    %c0_58 = arith.constant 0 : index
    %c1_59 = arith.constant 1 : index
    %c0_60 = arith.constant 0 : index
    %c0_61 = arith.constant 0 : index
    %167 = vector.load %arg4[%c0_58, %c1_59, %c0_60, %c0_61] : memref<1x2x32x32xbf16, #tpu.memory_space<vmem>>, vector<1x1x32x32xbf16>
    %168 = vector.shape_cast %167 : vector<1x1x32x32xbf16> to vector<32x32xbf16>
    %c0_62 = arith.constant 0 : index
    %c1_63 = arith.constant 1 : index
    %c0_64 = arith.constant 0 : index
    %c0_65 = arith.constant 0 : index
    %169 = vector.load %arg5[%c0_62, %c1_63, %c0_64, %c0_65] : memref<1x2x32x64xbf16, #tpu.memory_space<vmem>>, vector<1x1x32x64xbf16>
    %170 = vector.shape_cast %169 : vector<1x1x32x64xbf16> to vector<32x64xbf16>
    %c0_66 = arith.constant 0 : index
    %c1_67 = arith.constant 1 : index
    %c0_68 = arith.constant 0 : index
    %c0_69 = arith.constant 0 : index
    %171 = vector.load %arg6[%c0_66, %c1_67, %c0_68, %c0_69] : memref<1x2x64x32xbf16, #tpu.memory_space<vmem>>, vector<1x1x64x32xbf16>
    %172 = vector.shape_cast %171 : vector<1x1x64x32xbf16> to vector<64x32xbf16>
    %c0_70 = arith.constant 0 : index
    %c1_71 = arith.constant 1 : index
    %c0_72 = arith.constant 0 : index
    %c0_73 = arith.constant 0 : index
    %173 = vector.load %arg7[%c0_70, %c1_71, %c0_72, %c0_73] : memref<1x2x8x128xf32, #tpu.memory_space<vmem>>, vector<1x1x8x128xf32>
    %174 = vector.shape_cast %173 : vector<1x1x8x128xf32> to vector<8x128xf32>
    %175 = vector.extract_strided_slice %174 {offsets = [0, 0], sizes = [1, 96], strides = [1, 1]} : vector<8x128xf32> to vector<1x96xf32>
    %176 = vector.extract_strided_slice %174 {offsets = [1, 0], sizes = [1, 32], strides = [1, 1]} : vector<8x128xf32> to vector<1x32xf32>
    %177 = vector.extract_strided_slice %174 {offsets = [2, 0], sizes = [1, 64], strides = [1, 1]} : vector<8x128xf32> to vector<1x64xf32>
    %178 = vector.extract_strided_slice %174 {offsets = [3, 0], sizes = [1, 32], strides = [1, 1]} : vector<8x128xf32> to vector<1x32xf32>
    %179 = vector.extract_strided_slice %174 {offsets = [4, 0], sizes = [1, 32], strides = [1, 1]} : vector<8x128xf32> to vector<1x32xf32>
    %180 = vector.extract_strided_slice %174 {offsets = [5, 0], sizes = [1, 32], strides = [1, 1]} : vector<8x128xf32> to vector<1x32xf32>
    %181 = vector.extract_strided_slice %174 {offsets = [6, 0], sizes = [1, 32], strides = [1, 1]} : vector<8x128xf32> to vector<1x32xf32>
    %182 = vector.extract_strided_slice %174 {offsets = [7, 0], sizes = [1, 32], strides = [1, 1]} : vector<8x128xf32> to vector<1x32xf32>
    %183 = arith.truncf %164 : vector<16x32xf32> to vector<16x32xbf16>
    %cst_74 = arith.constant dense<0.000000e+00> : vector<16x96xf32>
    %184 = tpu.matmul %183, %166, %cst_74 {dimension_numbers = #tpu.dot_dimension_numbers<[1], [0], [0], [1], [0, 0, 1, 1], [], []>} : vector<16x32xbf16>, vector<32x96xbf16>, vector<16x96xf32> -> vector<16x96xf32>
    %185 = vector.broadcast %175 : vector<1x96xf32> to vector<16x96xf32>
    %186 = arith.addf %184, %185 : vector<16x96xf32>
    %187 = vector.extract_strided_slice %186 {offsets = [0, 0], sizes = [16, 8], strides = [1, 1]} : vector<16x96xf32> to vector<16x8xf32>
    %188 = arith.truncf %187 : vector<16x8xf32> to vector<16x8xbf16>
    %189 = vector.extract_strided_slice %186 {offsets = [0, 32], sizes = [16, 8], strides = [1, 1]} : vector<16x96xf32> to vector<16x8xf32>
    %190 = arith.truncf %189 : vector<16x8xf32> to vector<16x8xbf16>
    %cst_75 = arith.constant dense<0.000000e+00> : vector<16x16xf32>
    %191 = tpu.matmul %188, %190, %cst_75 {dimension_numbers = #tpu.dot_dimension_numbers<[1], [1], [0], [0], [0, 0, 1, 0], [], []>} : vector<16x8xbf16>, vector<16x8xbf16>, vector<16x16xf32> -> vector<16x16xf32>
    %192 = arith.addf %191, %3 : vector<16x16xf32>
    %193 = vector.extract_strided_slice %186 {offsets = [0, 8], sizes = [16, 8], strides = [1, 1]} : vector<16x96xf32> to vector<16x8xf32>
    %194 = arith.truncf %193 : vector<16x8xf32> to vector<16x8xbf16>
    %195 = vector.extract_strided_slice %186 {offsets = [0, 40], sizes = [16, 8], strides = [1, 1]} : vector<16x96xf32> to vector<16x8xf32>
    %196 = arith.truncf %195 : vector<16x8xf32> to vector<16x8xbf16>
    %cst_76 = arith.constant dense<0.000000e+00> : vector<16x16xf32>
    %197 = tpu.matmul %194, %196, %cst_76 {dimension_numbers = #tpu.dot_dimension_numbers<[1], [1], [0], [0], [0, 0, 1, 0], [], []>} : vector<16x8xbf16>, vector<16x8xbf16>, vector<16x16xf32> -> vector<16x16xf32>
    %198 = arith.addf %197, %3 : vector<16x16xf32>
    %199 = vector.extract_strided_slice %186 {offsets = [0, 16], sizes = [16, 8], strides = [1, 1]} : vector<16x96xf32> to vector<16x8xf32>
    %200 = arith.truncf %199 : vector<16x8xf32> to vector<16x8xbf16>
    %201 = vector.extract_strided_slice %186 {offsets = [0, 48], sizes = [16, 8], strides = [1, 1]} : vector<16x96xf32> to vector<16x8xf32>
    %202 = arith.truncf %201 : vector<16x8xf32> to vector<16x8xbf16>
    %cst_77 = arith.constant dense<0.000000e+00> : vector<16x16xf32>
    %203 = tpu.matmul %200, %202, %cst_77 {dimension_numbers = #tpu.dot_dimension_numbers<[1], [1], [0], [0], [0, 0, 1, 0], [], []>} : vector<16x8xbf16>, vector<16x8xbf16>, vector<16x16xf32> -> vector<16x16xf32>
    %204 = arith.addf %203, %3 : vector<16x16xf32>
    %205 = vector.extract_strided_slice %186 {offsets = [0, 24], sizes = [16, 8], strides = [1, 1]} : vector<16x96xf32> to vector<16x8xf32>
    %206 = arith.truncf %205 : vector<16x8xf32> to vector<16x8xbf16>
    %207 = vector.extract_strided_slice %186 {offsets = [0, 56], sizes = [16, 8], strides = [1, 1]} : vector<16x96xf32> to vector<16x8xf32>
    %208 = arith.truncf %207 : vector<16x8xf32> to vector<16x8xbf16>
    %cst_78 = arith.constant dense<0.000000e+00> : vector<16x16xf32>
    %209 = tpu.matmul %206, %208, %cst_78 {dimension_numbers = #tpu.dot_dimension_numbers<[1], [1], [0], [0], [0, 0, 1, 0], [], []>} : vector<16x8xbf16>, vector<16x8xbf16>, vector<16x16xf32> -> vector<16x16xf32>
    %210 = arith.addf %209, %3 : vector<16x16xf32>
    %211 = tpu.concatenate %192, %198, %204, %210 in 0 : vector<16x16xf32>, vector<16x16xf32>, vector<16x16xf32>, vector<16x16xf32> -> vector<64x16xf32>
    %cst_79 = arith.constant dense<0xFF800000> : vector<64xf32>
    %212 = vector.multi_reduction <maximumf>, %211, %cst_79 [1] : vector<64x16xf32> to vector<64xf32>
    %213 = vector.shape_cast %212 : vector<64xf32> to vector<64x1xf32>
    %214 = vector.broadcast %213 : vector<64x1xf32> to vector<64x16xf32>
    %215 = arith.subf %211, %214 : vector<64x16xf32>
    %216 = math.exp %215 : vector<64x16xf32>
    %cst_80 = arith.constant dense<0.000000e+00> : vector<64xf32>
    %217 = vector.multi_reduction <add>, %216, %cst_80 [1] : vector<64x16xf32> to vector<64xf32>
    %218 = vector.shape_cast %217 : vector<64xf32> to vector<64x1xf32>
    %219 = vector.broadcast %218 : vector<64x1xf32> to vector<64x16xf32>
    %220 = arith.divf %216, %219 : vector<64x16xf32>
    %221 = arith.truncf %220 : vector<64x16xf32> to vector<64x16xbf16>
    %222 = vector.extract_strided_slice %221 {offsets = [0, 0], sizes = [16, 16], strides = [1, 1]} : vector<64x16xbf16> to vector<16x16xbf16>
    %223 = vector.extract_strided_slice %186 {offsets = [0, 64], sizes = [16, 8], strides = [1, 1]} : vector<16x96xf32> to vector<16x8xf32>
    %224 = arith.truncf %223 : vector<16x8xf32> to vector<16x8xbf16>
    %cst_81 = arith.constant dense<0.000000e+00> : vector<16x8xf32>
    %225 = tpu.matmul %222, %224, %cst_81 {dimension_numbers = #tpu.dot_dimension_numbers<[1], [0], [0], [1], [0, 0, 1, 1], [], []>} : vector<16x16xbf16>, vector<16x8xbf16>, vector<16x8xf32> -> vector<16x8xf32>
    %226 = arith.truncf %225 : vector<16x8xf32> to vector<16x8xbf16>
    %227 = vector.extract_strided_slice %168 {offsets = [0, 0], sizes = [8, 32], strides = [1, 1]} : vector<32x32xbf16> to vector<8x32xbf16>
    %cst_82 = arith.constant dense<0.000000e+00> : vector<16x32xf32>
    %228 = tpu.matmul %226, %227, %cst_82 {dimension_numbers = #tpu.dot_dimension_numbers<[1], [0], [0], [1], [0, 0, 1, 1], [], []>} : vector<16x8xbf16>, vector<8x32xbf16>, vector<16x32xf32> -> vector<16x32xf32>
    %229 = vector.extract_strided_slice %221 {offsets = [16, 0], sizes = [16, 16], strides = [1, 1]} : vector<64x16xbf16> to vector<16x16xbf16>
    %230 = vector.extract_strided_slice %186 {offsets = [0, 72], sizes = [16, 8], strides = [1, 1]} : vector<16x96xf32> to vector<16x8xf32>
    %231 = arith.truncf %230 : vector<16x8xf32> to vector<16x8xbf16>
    %cst_83 = arith.constant dense<0.000000e+00> : vector<16x8xf32>
    %232 = tpu.matmul %229, %231, %cst_83 {dimension_numbers = #tpu.dot_dimension_numbers<[1], [0], [0], [1], [0, 0, 1, 1], [], []>} : vector<16x16xbf16>, vector<16x8xbf16>, vector<16x8xf32> -> vector<16x8xf32>
    %233 = arith.truncf %232 : vector<16x8xf32> to vector<16x8xbf16>
    %234 = vector.extract_strided_slice %168 {offsets = [8, 0], sizes = [8, 32], strides = [1, 1]} : vector<32x32xbf16> to vector<8x32xbf16>
    %cst_84 = arith.constant dense<0.000000e+00> : vector<16x32xf32>
    %235 = tpu.matmul %233, %234, %cst_84 {dimension_numbers = #tpu.dot_dimension_numbers<[1], [0], [0], [1], [0, 0, 1, 1], [], []>} : vector<16x8xbf16>, vector<8x32xbf16>, vector<16x32xf32> -> vector<16x32xf32>
    %236 = arith.addf %228, %235 : vector<16x32xf32>
    %237 = vector.extract_strided_slice %221 {offsets = [32, 0], sizes = [16, 16], strides = [1, 1]} : vector<64x16xbf16> to vector<16x16xbf16>
    %238 = vector.extract_strided_slice %186 {offsets = [0, 80], sizes = [16, 8], strides = [1, 1]} : vector<16x96xf32> to vector<16x8xf32>
    %239 = arith.truncf %238 : vector<16x8xf32> to vector<16x8xbf16>
    %cst_85 = arith.constant dense<0.000000e+00> : vector<16x8xf32>
    %240 = tpu.matmul %237, %239, %cst_85 {dimension_numbers = #tpu.dot_dimension_numbers<[1], [0], [0], [1], [0, 0, 1, 1], [], []>} : vector<16x16xbf16>, vector<16x8xbf16>, vector<16x8xf32> -> vector<16x8xf32>
    %241 = arith.truncf %240 : vector<16x8xf32> to vector<16x8xbf16>
    %242 = vector.extract_strided_slice %168 {offsets = [16, 0], sizes = [8, 32], strides = [1, 1]} : vector<32x32xbf16> to vector<8x32xbf16>
    %cst_86 = arith.constant dense<0.000000e+00> : vector<16x32xf32>
    %243 = tpu.matmul %241, %242, %cst_86 {dimension_numbers = #tpu.dot_dimension_numbers<[1], [0], [0], [1], [0, 0, 1, 1], [], []>} : vector<16x8xbf16>, vector<8x32xbf16>, vector<16x32xf32> -> vector<16x32xf32>
    %244 = arith.addf %236, %243 : vector<16x32xf32>
    %245 = vector.extract_strided_slice %221 {offsets = [48, 0], sizes = [16, 16], strides = [1, 1]} : vector<64x16xbf16> to vector<16x16xbf16>
    %246 = vector.extract_strided_slice %186 {offsets = [0, 88], sizes = [16, 8], strides = [1, 1]} : vector<16x96xf32> to vector<16x8xf32>
    %247 = arith.truncf %246 : vector<16x8xf32> to vector<16x8xbf16>
    %cst_87 = arith.constant dense<0.000000e+00> : vector<16x8xf32>
    %248 = tpu.matmul %245, %247, %cst_87 {dimension_numbers = #tpu.dot_dimension_numbers<[1], [0], [0], [1], [0, 0, 1, 1], [], []>} : vector<16x16xbf16>, vector<16x8xbf16>, vector<16x8xf32> -> vector<16x8xf32>
    %249 = arith.truncf %248 : vector<16x8xf32> to vector<16x8xbf16>
    %250 = vector.extract_strided_slice %168 {offsets = [24, 0], sizes = [8, 32], strides = [1, 1]} : vector<32x32xbf16> to vector<8x32xbf16>
    %cst_88 = arith.constant dense<0.000000e+00> : vector<16x32xf32>
    %251 = tpu.matmul %249, %250, %cst_88 {dimension_numbers = #tpu.dot_dimension_numbers<[1], [0], [0], [1], [0, 0, 1, 1], [], []>} : vector<16x8xbf16>, vector<8x32xbf16>, vector<16x32xf32> -> vector<16x32xf32>
    %252 = arith.addf %244, %251 : vector<16x32xf32>
    %253 = vector.broadcast %176 : vector<1x32xf32> to vector<16x32xf32>
    %254 = arith.addf %252, %253 : vector<16x32xf32>
    %255 = arith.addf %164, %254 : vector<16x32xf32>
    %cst_89 = arith.constant dense<0.000000e+00> : vector<16xf32>
    %256 = vector.multi_reduction <add>, %255, %cst_89 [1] : vector<16x32xf32> to vector<16xf32>
    %257 = vector.shape_cast %256 : vector<16xf32> to vector<16x1xf32>
    %cst_90 = arith.constant 3.200000e+01 : f32
    %258 = vector.broadcast %cst_90 : f32 to vector<16x1xf32>
    %259 = arith.divf %257, %258 : vector<16x1xf32>
    %260 = vector.broadcast %259 : vector<16x1xf32> to vector<16x32xf32>
    %261 = arith.subf %255, %260 : vector<16x32xf32>
    %262 = vector.broadcast %259 : vector<16x1xf32> to vector<16x32xf32>
    %263 = arith.subf %255, %262 : vector<16x32xf32>
    %264 = arith.mulf %261, %263 : vector<16x32xf32>
    %cst_91 = arith.constant dense<0.000000e+00> : vector<16xf32>
    %265 = vector.multi_reduction <add>, %264, %cst_91 [1] : vector<16x32xf32> to vector<16xf32>
    %266 = vector.shape_cast %265 : vector<16xf32> to vector<16x1xf32>
    %cst_92 = arith.constant 3.200000e+01 : f32
    %267 = vector.broadcast %cst_92 : f32 to vector<16x1xf32>
    %268 = arith.divf %266, %267 : vector<16x1xf32>
    %269 = vector.broadcast %259 : vector<16x1xf32> to vector<16x32xf32>
    %270 = arith.subf %255, %269 : vector<16x32xf32>
    %cst_93 = arith.constant 9.99999996E-13 : f32
    %271 = vector.broadcast %cst_93 : f32 to vector<16x1xf32>
    %272 = arith.addf %268, %271 : vector<16x1xf32>
    %273 = math.rsqrt %272 : vector<16x1xf32>
    %274 = vector.broadcast %273 : vector<16x1xf32> to vector<16x32xf32>
    %275 = arith.mulf %270, %274 : vector<16x32xf32>
    %276 = vector.broadcast %179 : vector<1x32xf32> to vector<16x32xf32>
    %277 = arith.mulf %275, %276 : vector<16x32xf32>
    %278 = vector.broadcast %180 : vector<1x32xf32> to vector<16x32xf32>
    %279 = arith.addf %277, %278 : vector<16x32xf32>
    %280 = arith.truncf %279 : vector<16x32xf32> to vector<16x32xbf16>
    %cst_94 = arith.constant dense<0.000000e+00> : vector<16x64xf32>
    %281 = tpu.matmul %280, %170, %cst_94 {dimension_numbers = #tpu.dot_dimension_numbers<[1], [0], [0], [1], [0, 0, 1, 1], [], []>} : vector<16x32xbf16>, vector<32x64xbf16>, vector<16x64xf32> -> vector<16x64xf32>
    %282 = vector.broadcast %177 : vector<1x64xf32> to vector<16x64xf32>
    %283 = arith.addf %281, %282 : vector<16x64xf32>
    %284 = arith.mulf %283, %283 : vector<16x64xf32>
    %285 = arith.mulf %283, %284 : vector<16x64xf32>
    %cst_95 = arith.constant 4.471500e-02 : f32
    %286 = vector.broadcast %cst_95 : f32 to vector<16x64xf32>
    %287 = arith.mulf %286, %285 : vector<16x64xf32>
    %288 = arith.addf %283, %287 : vector<16x64xf32>
    %cst_96 = arith.constant 0.797884583 : f32
    %289 = vector.broadcast %cst_96 : f32 to vector<16x64xf32>
    %290 = arith.mulf %289, %288 : vector<16x64xf32>
    %291 = math.tanh %290 : vector<16x64xf32>
    %cst_97 = arith.constant 1.000000e+00 : f32
    %292 = vector.broadcast %cst_97 : f32 to vector<16x64xf32>
    %293 = arith.addf %292, %291 : vector<16x64xf32>
    %cst_98 = arith.constant 5.000000e-01 : f32
    %294 = vector.broadcast %cst_98 : f32 to vector<16x64xf32>
    %295 = arith.mulf %294, %293 : vector<16x64xf32>
    %296 = arith.mulf %283, %295 : vector<16x64xf32>
    %297 = arith.truncf %296 : vector<16x64xf32> to vector<16x64xbf16>
    %cst_99 = arith.constant dense<0.000000e+00> : vector<16x32xf32>
    %298 = tpu.matmul %297, %172, %cst_99 {dimension_numbers = #tpu.dot_dimension_numbers<[1], [0], [0], [1], [0, 0, 1, 1], [], []>} : vector<16x64xbf16>, vector<64x32xbf16>, vector<16x32xf32> -> vector<16x32xf32>
    %299 = vector.broadcast %178 : vector<1x32xf32> to vector<16x32xf32>
    %300 = arith.addf %298, %299 : vector<16x32xf32>
    %301 = arith.addf %279, %300 : vector<16x32xf32>
    %cst_100 = arith.constant dense<0.000000e+00> : vector<16xf32>
    %302 = vector.multi_reduction <add>, %301, %cst_100 [1] : vector<16x32xf32> to vector<16xf32>
    %303 = vector.shape_cast %302 : vector<16xf32> to vector<16x1xf32>
    %cst_101 = arith.constant 3.200000e+01 : f32
    %304 = vector.broadcast %cst_101 : f32 to vector<16x1xf32>
    %305 = arith.divf %303, %304 : vector<16x1xf32>
    %306 = vector.broadcast %305 : vector<16x1xf32> to vector<16x32xf32>
    %307 = arith.subf %301, %306 : vector<16x32xf32>
    %308 = vector.broadcast %305 : vector<16x1xf32> to vector<16x32xf32>
    %309 = arith.subf %301, %308 : vector<16x32xf32>
    %310 = arith.mulf %307, %309 : vector<16x32xf32>
    %cst_102 = arith.constant dense<0.000000e+00> : vector<16xf32>
    %311 = vector.multi_reduction <add>, %310, %cst_102 [1] : vector<16x32xf32> to vector<16xf32>
    %312 = vector.shape_cast %311 : vector<16xf32> to vector<16x1xf32>
    %cst_103 = arith.constant 3.200000e+01 : f32
    %313 = vector.broadcast %cst_103 : f32 to vector<16x1xf32>
    %314 = arith.divf %312, %313 : vector<16x1xf32>
    %315 = vector.broadcast %305 : vector<16x1xf32> to vector<16x32xf32>
    %316 = arith.subf %301, %315 : vector<16x32xf32>
    %cst_104 = arith.constant 9.99999996E-13 : f32
    %317 = vector.broadcast %cst_104 : f32 to vector<16x1xf32>
    %318 = arith.addf %314, %317 : vector<16x1xf32>
    %319 = math.rsqrt %318 : vector<16x1xf32>
    %320 = vector.broadcast %319 : vector<16x1xf32> to vector<16x32xf32>
    %321 = arith.mulf %316, %320 : vector<16x32xf32>
    %322 = vector.broadcast %181 : vector<1x32xf32> to vector<16x32xf32>
    %323 = arith.mulf %321, %322 : vector<16x32xf32>
    %324 = vector.broadcast %182 : vector<1x32xf32> to vector<16x32xf32>
    %325 = arith.addf %323, %324 : vector<16x32xf32>
    %c0_105 = arith.constant 0 : index
    %c0_106 = arith.constant 0 : index
    %c0_107 = arith.constant 0 : index
    %326 = vector.load %arg8[%c0_105, %c0_106, %c0_107] : memref<1x16x32xf32, #tpu.memory_space<vmem>>, vector<1x16x32xf32>
    %327 = vector.shape_cast %326 : vector<1x16x32xf32> to vector<16x32xf32>
    %328 = vector.shape_cast %325 : vector<16x32xf32> to vector<1x16x32xf32>
    tpu.vector_store %arg8[%c0_105, %c0_106, %c0_107], %328 {strides = array<i32>} : memref<1x16x32xf32, #tpu.memory_space<vmem>>, vector<1x16x32xf32>,
    return
  }
  func.func @transform_0(%arg0: i32) -> (i32, i32, i32) {
    %c0_i32 = arith.constant 0 : i32
    %c0_i32_0 = arith.constant 0 : i32
    %c0_i32_1 = arith.constant 0 : i32
    return %arg0, %c0_i32, %c0_i32_0 : i32, i32, i32
  }
  func.func @transform_1(%arg0: i32) -> (i32, i32, i32) {
    %c0_i32 = arith.constant 0 : i32
    %c0_i32_0 = arith.constant 0 : i32
    %c0_i32_1 = arith.constant 0 : i32
    return %arg0, %c0_i32, %c0_i32_0 : i32, i32, i32
  }
  func.func @transform_2(%arg0: i32) -> (i32, i32, i32, i32) {
    %c0_i32 = arith.constant 0 : i32
    %c0_i32_0 = arith.constant 0 : i32
    %c0_i32_1 = arith.constant 0 : i32
    %c0_i32_2 = arith.constant 0 : i32
    return %arg0, %c0_i32, %c0_i32_0, %c0_i32_1 : i32, i32, i32, i32
  }
  func.func @transform_3(%arg0: i32) -> (i32, i32, i32, i32) {
    %c0_i32 = arith.constant 0 : i32
    %c0_i32_0 = arith.constant 0 : i32
    %c0_i32_1 = arith.constant 0 : i32
    %c0_i32_2 = arith.constant 0 : i32
    return %arg0, %c0_i32, %c0_i32_0, %c0_i32_1 : i32, i32, i32, i32
  }
  func.func @transform_4(%arg0: i32) -> (i32, i32, i32, i32) {
    %c0_i32 = arith.constant 0 : i32
    %c0_i32_0 = arith.constant 0 : i32
    %c0_i32_1 = arith.constant 0 : i32
    %c0_i32_2 = arith.constant 0 : i32
    return %arg0, %c0_i32, %c0_i32_0, %c0_i32_1 : i32, i32, i32, i32
  }
  func.func @transform_5(%arg0: i32) -> (i32, i32, i32, i32) {
    %c0_i32 = arith.constant 0 : i32
    %c0_i32_0 = arith.constant 0 : i32
    %c0_i32_1 = arith.constant 0 : i32
    %c0_i32_2 = arith.constant 0 : i32
    return %arg0, %c0_i32, %c0_i32_0, %c0_i32_1 : i32, i32, i32, i32
  }
  func.func @transform_6(%arg0: i32) -> (i32, i32, i32, i32) {
    %c0_i32 = arith.constant 0 : i32
    %c0_i32_0 = arith.constant 0 : i32
    %c0_i32_1 = arith.constant 0 : i32
    %c0_i32_2 = arith.constant 0 : i32
    return %arg0, %c0_i32, %c0_i32_0, %c0_i32_1 : i32, i32, i32, i32
  }
  func.func @transform_7(%arg0: i32) -> (i32, i32, i32) {
    %c0_i32 = arith.constant 0 : i32
    %c0_i32_0 = arith.constant 0 : i32
    %c0_i32_1 = arith.constant 0 : i32
    return %arg0, %c0_i32, %c0_i32_0 : i32, i32, i32
  }
}

</mosaic_0001>

<bundles_post_ra>
// kernel: dpr_combined_forward.1
= control target key start
LH: loop header
LB: loop body
LE: loop exit
PB: predicated region body
PF: predicated region fallthrough
CT: control target
= control target key end

     0   :  { %s3098_s24 = smov 0   ;;  %s3544_s0 = inlined_call_operand.vmem [shape: f32[2,16,32], index: 0, kind: input, shape index: {}]   ;;  %s3545_s1 = inlined_call_operand.vmem [shape: f32[2,16,16], index: 1, kind: input, shape index: {}]   ;;  %s3546_s2 = inlined_call_operand.vmem [shape: bf16[2,2,32,96], index: 2, kind: input, shape index: {}]   ;;  %s3547_s3 = inlined_call_operand.vmem [shape: bf16[2,2,32,32], index: 3, kind: input, shape index: {}]   ;;  %s3548_s4 = inlined_call_operand.vmem [shape: bf16[2,2,32,64], index: 4, kind: input, shape index: {}]   ;;  %s3549_s5 = inlined_call_operand.vmem [shape: bf16[2,2,64,32], index: 5, kind: input, shape index: {}]   ;;  %s3550_s6 = inlined_call_operand.vmem [shape: f32[2,2,8,128], index: 6, kind: input, shape index: {}]   ;;  %s3551_s7 = inlined_call_operand.vmem [shape: f32[2,16,32], index: 7, kind: output, shape index: {}]  }
   0x1 LB: > { %s2544_s25 = sadd.s32 4294967295, %s3043_s24   ;;  %p2548_p0 = scmp.ge.s32.totalorder %s3043_s24, 1  ;;  %s3043_s24 = sphi %s3098_s24, %s17_s24  }
   0x2   : > { %p297_p1 = scmp.lt.s32.totalorder %s3043_s24, 3 }
   0x4   : > { %p298_p2 = pnand %p2548_p0, %p297_p1 }
   0x5   : > { %p359_p3 = scmp.lt.s32.totalorder (!%p298_p2), %s2544_s25, 1  ;;  %v3045_v0 = vmov (!%p298_p2), 0.0   ;;  %vm3046_vm0 = vmmov (!%p298_p2), 0   ;;  %vm442_vm1 = vcmask (!%p298_p2), 261120   ;;  %v426_v6 = vlaneseq (!%p298_p2)  ;;  %s3047_s21 = smov (!%p298_p2), 96  }
   0x6   : > { %301 = sbr.rel (%p298_p2) target bundleno = 5295 (0x14af), region = 48  ;;  %2712 = vmatprep.subr.bf16.mxu1 (!%p298_p2), %v3045_v0  ;;  %2716 = vmatprep.mubr.msk.bf16.mxu1 (!%p298_p2), %vm3046_vm0, %v3045_v0  ;;  %s3048_s22 = smov (!%p298_p2), 88   ;;  %vm491_vm2 = vcmask (!%p298_p2), 64512   ;;  %vm692_vm3 = vcmask (!%p298_p2), 130048   ;;  %vm884_vm4 = vcmask (!%p298_p2), 1043456   ;;  %vm1325_vm5 = vcmask (!%p298_p2), 523264  }
   0x7   : > { %2726 = vmatprep.subr.bf16.mxu0 (!%p298_p2), %v3045_v0  ;;  %2728 = vmatprep.mubr.msk.bf16.mxu0 (!%p298_p2), %vm3046_vm0, %v3045_v0  ;;  %v3150_v7 = vshrl.u32 (!%p298_p2), %v426_v6, 7  ;;  %s3049_s23 = smov (!%p298_p2), 80   ;;  %s3051_s27 = smov (!%p298_p2), 72  }
   0x8   : > { %s3052_s28 = smov (!%p298_p2), 112   ;;  %s3054_s12 = smov (!%p298_p2), 56  }
   0x9   : > { %v428_v8 = vsub.s32 (!%p298_p2), 0, %v3150_v7  ;;  %s3055_s13 = smov (!%p298_p2), 64   ;;  %s3056_s15 = smov (!%p298_p2), 48  }
   0xa   : > { %s3057_s16 = smov (!%p298_p2), 40  }
   0xd   : > { %s3553_s25 = smov (!%p359_p3, %s2544_s25), 1 }
   0xe   : > { %s3112_s26 = sshll.u32 %s3553_s25, 5  ;;  %s2639_s30 = sshll.u32 %s3553_s25, 6 }
   0xf   : > { %s3118_s29 = scalar_lea.vmem %s3546_s2, %s3112_s26  ;;  %s3121_s8 = sshll.u32 %s3553_s25, 4 }
  0x10   : > { %v2933_v1 = vld [vmem:[%s3118_s29] sm:$0xff]   ;;  %s363_s11 = scalar_lea.vmem %s3544_s0, %s3121_s8  ;;  %s3131_s14 = scalar_lea.vmem %s3548_s4, %s3112_s26  ;;  %v2934_v2 = vld [vmem:[%s3118_s29 + $0x8] sm:$0xff]  }
  0x11   : > { %2713 = vmatpush3.bf16.msra.mxu1 %v2933_v1  ;;  %v3134_v3 = vld [vmem:[%s363_s11] sm:$0xff]  ;;  %v3136_v4 = vld [vmem:[%s363_s11 + $0x8] sm:$0xff]  ;;  %s3141_s17 = scalar_lea.vmem %s3549_s5, %s2639_s30  ;;  %s3156_s20 = scalar_lea.vmem %s3550_s6, %s3121_s8 }
  0x12   : > { %2714 = vmatprep.subr.bf16.mxu1 %v3045_v0  ;;  %v425_v5 = vpack.c.bf16 %v3136_v4, %v3134_v3  ;;  %v3160_v9 = vld [vmem:[%s3156_s20] sm:$0xff]  ;;  %s3050_s25 = smov 120   ;;  %s3053_s30 = smov 104  }
  0x13   : > { %v429_v10 = vrot.slane %v3160_v9, %v428_v8  ;;  %s368_s11 = scalar_lea.vmem %s3545_s1, %s3121_s8  ;;  %s3251_s9 = scalar_lea.vmem %s3547_s3, %s3112_s26 }
  0x14   : > { %v3206_v29 = vld [vmem:[%s368_s11] sm:$0xff]  ;;  %v3208_v32 = vld [vmem:[%s368_s11 + $0x8] sm:$0xff] }
  0x15   : > { %2715 = vmatpush3.bf16.msra.mxu1 %v2934_v2 }
  0x16   : > { %2720 = vmatprep.subr.bf16.mxu1 %v3045_v0 }
  0x18   : > { %2717 = vmatmul.mubr.msk.bf16.vlgmr.msra.gmra.mrb[0].mxu1 %vm442_vm1, %v425_v5 }
  0x19   : > { %2722 = vmatprep.mubr.msk.bf16.mxu1 %vm3046_vm0, %v3045_v0 }
  0xeb   : > { %v480_v11 = vpop.f32.mrb[0].mxu1 }
  0xec   : > { %v2718_v12 = vpop.f32.mrb[1].mxu1  ;;  %v481_v14 = vadd.f32 %v480_v11, %v429_v10 }
  0xed   : > { %v483_v13 = vpop.f32.mrb[2].mxu1 }
  0xee   : > { %v484_v15 = vadd.f32 %v483_v13, %v429_v10  ;;  %v2719_v16 = vpop.f32.mrb[3].mxu1 }
  0xf0   : > { %v3165_v17 = vpack.c.bf16 %v484_v15, %v481_v14 }
  0xf2   : > { %489 = vrot.lane.b32.xlu1 %v3165_v17, %s3047_s21  ;;  %541 = vrot.lane.b32.xlu0 %v3165_v17, %s3048_s22 }
  0xf6   : > { %592 = vrot.lane.b32.xlu1 %v3165_v17, %s3049_s23  ;;  %539 = vrot.lane.b32.xlu0 %v3165_v17, %s3050_s25 }
  0xfa   : > { %643 = vrot.lane.b32.xlu1 %v3165_v17, %s3051_s27  ;;  %590 = vrot.lane.b32.xlu0 %v3165_v17, %s3052_s28 }
  0xfe   : > { %641 = vrot.lane.b32.xlu0 %v3165_v17, %s3053_s30 }
 0x164   : > { %v490_v18 = vpop.permute.xlu1 %489  ;;  %v542_v19 = vpop.permute.xlu0 %541 }
 0x165   : > { %v496_v20 = vsel %vm491_vm2, %v490_v18, 0  ;;  %v547_v21 = vsel %vm491_vm2, %v542_v19, 0 }
 0x166   : > { %2721 = vmatpush3.bf16.xpose.msra.mxu1 %v496_v20  ;;  %2727 = vmatpush3.bf16.xpose.msra.mxu0 %v547_v21 }
 0x167   : > { %2732 = vmatprep.subr.bf16.mxu1 %v3045_v0  ;;  %2738 = vmatprep.subr.bf16.mxu0 %v3045_v0 }
 0x168   : > { %v593_v22 = vpop.permute.xlu1 %592  ;;  %v540_v23 = vpop.permute.xlu0 %539 }
 0x169   : > { %v598_v25 = vsel %vm491_vm2, %v593_v22, 0 }
 0x16c   : > { %v644_v24 = vpop.permute.xlu1 %643  ;;  %v591_v27 = vpop.permute.xlu0 %590 }
 0x16d   : > { %v649_v26 = vsel %vm491_vm2, %v644_v24, 0  ;;  %2723 = vmatmul.mubr.msk.bf16.vlgmr.msra.gmra.mrb[4].mxu1 %vm491_vm2, %v3165_v17  ;;  %2729 = vmatmul.mubr.msk.bf16.vlgmr.msra.gmra.mrb[0].mxu0 %vm491_vm2, %v540_v23 }
 0x16e   : > { %2733 = vmatpush3.bf16.xpose.msra.mxu1 %v598_v25  ;;  %2739 = vmatpush3.bf16.xpose.msra.mxu0 %v649_v26 }
 0x16f   : > { %2734 = vmatprep.mubr.msk.bf16.mxu1 %vm3046_vm0, %v3045_v0  ;;  %2740 = vmatprep.mubr.msk.bf16.mxu0 %vm3046_vm0, %v3045_v0 }
 0x170   : > { %2750 = vmatprep.subr.bf16.mxu0 %v3045_v0  ;;  %2744 = vmatprep.subr.bf16.mxu1 %v3045_v0  ;;  %v642_v28 = vpop.permute.xlu0 %641 }
 0x175   : > { %2735 = vmatmul.mubr.msk.bf16.vlgmr.msra.gmra.mrb[8].mxu1 %vm491_vm2, %v591_v27  ;;  %2741 = vmatmul.mubr.msk.bf16.vlgmr.msra.gmra.mrb[4].mxu0 %vm491_vm2, %v642_v28 }
 0x176   : > { %2752 = vmatprep.mubr.msk.bf16.mxu0 %vm3046_vm0, %v3045_v0  ;;  %2746 = vmatprep.mubr.msk.bf16.mxu1 %vm3046_vm0, %v3045_v0 }
 0x240   : > { %v532_v30 = vpop.f32.mrb[4].mxu1  ;;  %v583_v31 = vpop.f32.mrb[0].mxu0 }
 0x241   : > { %v584_v33 = vadd.f32 %v583_v31, %v3206_v29  ;;  %v2724_v34 = vpop.f32.mrb[5].mxu1  ;;  %v2730_v35 = vpop.f32.mrb[1].mxu0  ;;  %v533_v60 = vadd.f32 %v532_v30, %v3206_v29 }
 0x242   : > { %v535_v36 = vpop.f32.mrb[6].mxu1  ;;  %v586_v37 = vpop.f32.mrb[2].mxu0 }
 0x243   : > { %v587_v38 = vadd.f32 %v586_v37, %v3208_v32  ;;  %v2725_v39 = vpop.f32.mrb[7].mxu1  ;;  %v2731_v40 = vpop.f32.mrb[3].mxu0  ;;  %v699_v41 = vsel %vm692_vm3, %v584_v33, -inf  ;;  %v536_v62 = vadd.f32 %v535_v36, %v3208_v32  ;;  %v693_v63 = vsel %vm692_vm3, %v533_v60, -inf }
 0x244   : > { %700 = vmax.xlane.f32.xlu1 %v699_v41 }
 0x245   : > { %v702_v42 = vsel %vm692_vm3, %v587_v38, -inf  ;;  %v696_v2 = vsel %vm692_vm3, %v536_v62, -inf }
 0x246   : > { %703 = vmax.xlane.f32.xlu0 %v702_v42 }
 0x248   : > { %v634_v43 = vpop.f32.mrb[8].mxu1  ;;  %v685_v44 = vpop.f32.mrb[4].mxu0 }
 0x249   : > { %v2736_v45 = vpop.f32.mrb[9].mxu1  ;;  %v2742_v46 = vpop.f32.mrb[5].mxu0  ;;  %v635_v1 = vadd.f32 %v634_v43, %v3206_v29  ;;  %v686_v10 = vadd.f32 %v685_v44, %v3206_v29 }
 0x24a   : > { %v637_v47 = vpop.f32.mrb[10].mxu1  ;;  %v688_v48 = vpop.f32.mrb[6].mxu0 }
 0x24b   : > { %v2737_v49 = vpop.f32.mrb[11].mxu1  ;;  %v2743_v50 = vpop.f32.mrb[7].mxu0  ;;  %v638_v5 = vadd.f32 %v637_v47, %v3208_v32  ;;  %v705_v6 = vsel %vm692_vm3, %v635_v1, -inf  ;;  %v689_v12 = vadd.f32 %v688_v48, %v3208_v32  ;;  %v711_v13 = vsel %vm692_vm3, %v686_v10, -inf }
 0x24d   : > { %v708_v11 = vsel %vm692_vm3, %v638_v5, -inf  ;;  %v714_v14 = vsel %vm692_vm3, %v689_v12, -inf }
 0x2d1   : > { %v701_v51 = vpop.xlane.xlu1 %700 }
 0x2d2   : > { %v719_v52 = vsub.f32 %v584_v33, %v701_v51 }
 0x2d3   : > { %v704_v53 = vpop.xlane.xlu0 %703 }
 0x2d4   : > { %v729_v54 = vmul.f32 1.442695, %v719_v52  ;;  %v720_v55 = vsub.f32 %v587_v38, %v704_v53 }
 0x2d6   : > { %2949 = vpow2.f32 %v729_v54  ;;  %v731_v56 = vmul.f32 1.442695, %v720_v55 }
 0x2d8   : > { %2951 = vpow2.f32 %v731_v56 }
 0x2e0   : > { %v2950_v57 = vpop.eup %2949 }
 0x2e1   : > { %v747_v58 = vsel %vm692_vm3, %v2950_v57, 0.0 }
 0x2e2   : > { %v2952_v59 = vpop.eup %2951  ;;  %748 = vadd.xlane.f32.xlu0 %v747_v58 }
 0x2e3   : > { %v750_v61 = vsel %vm692_vm3, %v2952_v59, 0.0 }
 0x2e4   : > { %751 = vadd.xlane.f32.xlu1 %v750_v61  ;;  %v409_v61 = vld [vmem:[%s3251_s9 + $0x4] sm:$0xf] }
 0x2e8   : > { %694 = vmax.xlane.f32.xlu1 %v693_v63 }
 0x2ec   : > { %697 = vmax.xlane.f32.xlu1 %v696_v2  ;;  %v886_v2 = vsel %vm884_vm4, %v409_v61, 0 }
 0x2f0   : > { %706 = vmax.xlane.f32.xlu1 %v705_v6 }
 0x2f4   : > { %709 = vmax.xlane.f32.xlu1 %v708_v11 }
 0x2f8   : > { %833 = vrot.lane.b32.xlu0 %v3165_v17, %s3054_s12  ;;  %712 = vmax.xlane.f32.xlu1 %v711_v13 }
 0x2fc   : > { %715 = vmax.xlane.f32.xlu1 %v714_v14 }
 0x30d   : > { %785 = vrot.lane.b32.xlu1 %v3165_v17, %s3055_s13 }
 0x36f   : > { %v749_v15 = vpop.xlane.xlu0 %748 }
 0x370   : > { %2953 = vrcp.f32 %v749_v15 }
 0x371   : > { %v752_v16 = vpop.xlane.xlu1 %751 }
 0x372   : > { %2955 = vrcp.f32 %v752_v16 }
 0x373   : > { %v834_v18 = vpop.permute.xlu0 %833 }
 0x374   : > { %2751 = vmatpush3.bf16.msra.mxu0 %v834_v18 }
 0x375   : > { %v695_v19 = vpop.xlane.xlu1 %694  ;;  %2762 = vmatprep.subr.bf16.mxu0 %v3045_v0 }
 0x376   : > { %v717_v20 = vsub.f32 %v533_v60, %v695_v19 }
 0x378   : > { %v725_v21 = vmul.f32 1.442695, %v717_v20 }
 0x379   : > { %v698_v22 = vpop.xlane.xlu1 %697 }
 0x37a   : > { %v2954_v23 = vpop.eup %2953  ;;  %2957 = vpow2.f32 %v725_v21  ;;  %v718_v24 = vsub.f32 %v536_v62, %v698_v22 }
 0x37b   : > { %v770_v27 = vmul.f32 %v2954_v23, %v2950_v57 }
 0x37c   : > { %v2956_v25 = vpop.eup %2955  ;;  %v727_v26 = vmul.f32 1.442695, %v718_v24 }
 0x37d   : > { %v772_v28 = vmul.f32 %v2956_v25, %v2952_v59  ;;  %v707_v30 = vpop.xlane.xlu1 %706 }
 0x37e   : > { %2959 = vpow2.f32 %v727_v26  ;;  %v721_v31 = vsub.f32 %v635_v1, %v707_v30  ;;  %v408_v30 = vld [vmem:[%s3251_s9] sm:$0xf] }
 0x37f   : > { %v782_v33 = vpack.c.bf16 %v772_v28, %v770_v27 }
 0x380   : > { %v733_v34 = vmul.f32 1.442695, %v721_v31  ;;  %v933_v31 = vsel %vm884_vm4, %v408_v30, 0 }
 0x381   : > { %2753 = vmatmul.mubr.msk.bf16.vlgmr.msra.gmra.mrb[8].mxu0 %vm692_vm3, %v782_v33  ;;  %v710_v35 = vpop.xlane.xlu1 %709 }
 0x382   : > { %2961 = vpow2.f32 %v733_v34  ;;  %2764 = vmatprep.mubr.msk.bf16.mxu0 %vm3046_vm0, %v3045_v0  ;;  %v722_v37 = vsub.f32 %v638_v5, %v710_v35  ;;  %2763 = vmatpush3.bf16.msra.mxu0 %v933_v31  ;;  %v410_v34 = vld [vmem:[%s3251_s9 + $0x8] sm:$0xf] }
 0x383   : > { %2774 = vmatprep.subr.bf16.mxu0 %v3045_v0 }
 0x384   : > { %v2958_v36 = vpop.eup %2957  ;;  %v735_v42 = vmul.f32 1.442695, %v722_v37 }
 0x385   : > { %v713_v38 = vpop.xlane.xlu1 %712  ;;  %v741_v39 = vsel %vm692_vm3, %v2958_v36, 0.0 }
 0x386   : > { %v723_v40 = vsub.f32 %v686_v10, %v713_v38  ;;  %742 = vadd.xlane.f32.xlu0 %v741_v39  ;;  %v1028_v39 = vsel %vm884_vm4, %v410_v34, 0 }
 0x388   : > { %v2960_v41 = vpop.eup %2959  ;;  %v737_v43 = vmul.f32 1.442695, %v723_v40 }
 0x389   : > { %v716_v44 = vpop.xlane.xlu1 %715  ;;  %v744_v45 = vsel %vm692_vm3, %v2960_v41, 0.0 }
 0x38a   : > { %2963 = vpow2.f32 %v737_v43  ;;  %v724_v46 = vsub.f32 %v689_v12, %v716_v44  ;;  %745 = vadd.xlane.f32.xlu1 %v744_v45  ;;  %v411_v45 = vld [vmem:[%s3251_s9 + $0xc] sm:$0xf] }
 0x38b   : > { %2965 = vpow2.f32 %v735_v42 }
 0x38c   : > { %v2962_v47 = vpop.eup %2961  ;;  %v739_v48 = vmul.f32 1.442695, %v724_v46 }
 0x38d   : > { %v786_v49 = vpop.permute.xlu1 %785  ;;  %v753_v50 = vsel %vm692_vm3, %v2962_v47, 0.0 }
 0x38e   : > { %754 = vadd.xlane.f32.xlu1 %v753_v50  ;;  %2745 = vmatpush3.bf16.msra.mxu1 %v786_v49  ;;  %2967 = vpow2.f32 %v739_v48  ;;  %v1125_v50 = vsel %vm884_vm4, %v411_v45, 0 }
 0x38f   : > { %2756 = vmatprep.subr.bf16.mxu1 %v3045_v0 }
 0x394   : > { %v2964_v51 = vpop.eup %2963 }
 0x395   : > { %v759_v52 = vsel %vm692_vm3, %v2964_v51, 0.0  ;;  %v2966_v53 = vpop.eup %2965 }
 0x396   : > { %760 = vadd.xlane.f32.xlu1 %v759_v52  ;;  %v756_v54 = vsel %vm692_vm3, %v2966_v53, 0.0 }
 0x398   : > { %v2968_v55 = vpop.eup %2967 }
 0x399   : > { %v762_v56 = vsel %vm692_vm3, %v2968_v55, 0.0 }
 0x39a   : > { %757 = vadd.xlane.f32.xlu1 %v756_v54 }
 0x39c   : > { %976 = vrot.lane.b32.xlu0 %v3165_v17, %s3056_s15 }
 0x39e   : > { %763 = vadd.xlane.f32.xlu1 %v762_v56 }
 0x3af   : > { %1073 = vrot.lane.b32.xlu1 %v3165_v17, %s3057_s16 }
 0x413   : > { %v743_v57 = vpop.xlane.xlu0 %742 }
 0x414   : > { %2969 = vrcp.f32 %v743_v57 }
 0x417   : > { %v746_v58 = vpop.xlane.xlu1 %745  ;;  %v977_v18 = vpop.permute.xlu0 %976 }
 0x418   : > { %2971 = vrcp.f32 %v746_v58 }
 0x41b   : > { %v755_v17 = vpop.xlane.xlu1 %754 }
 0x41e   : > { %v2970_v59 = vpop.eup %2969 }
 0x41f   : > { %v766_v62 = vmul.f32 %v2970_v59, %v2958_v36 }
 0x422   : > { %v2972_v60 = vpop.eup %2971 }
 0x423   : > { %v768_v63 = vmul.f32 %v2972_v60, %v2960_v41  ;;  %v761_v5 = vpop.xlane.xlu1 %760 }
 0x425   : > { %v781_v1 = vpack.c.bf16 %v768_v63, %v766_v62 }
 0x427   : > { %2747 = vmatmul.mubr.msk.bf16.vlgmr.msra.gmra.mrb[12].mxu1 %vm692_vm3, %v781_v1  ;;  %v758_v6 = vpop.xlane.xlu1 %757 }
 0x428   : > { %2757 = vmatpush3.bf16.msra.mxu1 %v886_v2  ;;  %2758 = vmatprep.mubr.msk.bf16.mxu1 %vm3046_vm0, %v3045_v0  ;;  %2973 = vrcp.f32 %v758_v6  ;;  %v1172_v6 = vsub.s32 1, %v3150_v7 }
 0x429   : > { %2768 = vmatprep.subr.bf16.mxu1 %v3045_v0  ;;  %2975 = vrcp.f32 %v755_v17 }
 0x42b   : > { %v764_v10 = vpop.xlane.xlu1 %763 }
 0x42c   : > { %2977 = vrcp.f32 %v764_v10  ;;  %v1173_v10 = vrot.slane %v3160_v9, %v1172_v6 }
 0x42d   : > { %2979 = vrcp.f32 %v761_v5 }
 0x42f   : > { %v1074_v24 = vpop.permute.xlu1 %1073 }
 0x432   : > { %v2974_v16 = vpop.eup %2973 }
 0x433   : > { %v2976_v19 = vpop.eup %2975  ;;  %v776_v20 = vmul.f32 %v2974_v16, %v2966_v53 }
 0x434   : > { %v774_v21 = vmul.f32 %v2976_v19, %v2962_v47 }
 0x436   : > { %v783_v22 = vpack.c.bf16 %v776_v20, %v774_v21  ;;  %v2978_v23 = vpop.eup %2977 }
 0x437   : > { %v2980_v25 = vpop.eup %2979  ;;  %v780_v26 = vmul.f32 %v2978_v23, %v2968_v55 }
 0x438   : > { %v778_v27 = vmul.f32 %v2980_v25, %v2964_v51 }
 0x43a   : > { %v784_v28 = vpack.c.bf16 %v780_v26, %v778_v27 }
 0x454   : > { %v873_v11 = vpop.f32.mrb[8].mxu0 }
 0x455   : > { %v2754_v12 = vpop.f32.mrb[9].mxu0 }
 0x456   : > { %v876_v13 = vpop.f32.mrb[10].mxu0 }
 0x457   : > { %v880_v14 = vpack.c.bf16 %v876_v13, %v873_v11  ;;  %v2755_v15 = vpop.f32.mrb[11].mxu0 }
 0x459   : > { %2759 = vmatmul.mubr.msk.bf16.vlgmr.msra.gmra.mrb[16].mxu1 %vm491_vm2, %v880_v14 }
 0x45a   : > { %2769 = vmatpush3.bf16.msra.mxu1 %v977_v18  ;;  %2770 = vmatprep.mubr.msk.bf16.mxu1 %vm3046_vm0, %v3045_v0 }
 0x45b   : > { %2780 = vmatprep.subr.bf16.mxu1 %v3045_v0 }
 0x461   : > { %2771 = vmatmul.mubr.msk.bf16.vlgmr.msra.gmra.mrb[20].mxu1 %vm692_vm3, %v783_v22 }
 0x462   : > { %2781 = vmatpush3.bf16.msra.mxu1 %v1074_v24  ;;  %2782 = vmatprep.mubr.msk.bf16.mxu1 %vm3046_vm0, %v3045_v0 }
 0x463   : > { %2792 = vmatprep.subr.bf16.mxu1 %v3045_v0 }
 0x469   : > { %2783 = vmatmul.mubr.msk.bf16.vlgmr.msra.gmra.mrb[24].mxu1 %vm692_vm3, %v784_v28 }
 0x46a   : > { %2796 = vmatprep.mubr.msk.bf16.mxu1 %vm3046_vm0, %v3045_v0 }
 0x4fa   : > { %v825_v33 = vpop.f32.mrb[12].mxu1 }
 0x4fb   : > { %v2748_v35 = vpop.f32.mrb[13].mxu1 }
 0x4fc   : > { %v828_v36 = vpop.f32.mrb[14].mxu1  ;;  %v2936_v35 = vld [vmem:[%s3131_s14 + $0x8] sm:$0xff]  }
 0x4fd   : > { %v832_v37 = vpack.c.bf16 %v828_v36, %v825_v33  ;;  %v2749_v38 = vpop.f32.mrb[15].mxu1 }
 0x4ff   : > { %2765 = vmatmul.mubr.msk.bf16.vlgmr.msra.gmra.mrb[12].mxu0 %vm491_vm2, %v832_v37 }
 0x500   : > { %2775 = vmatpush3.bf16.msra.mxu0 %v1028_v39  ;;  %2776 = vmatprep.mubr.msk.bf16.mxu0 %vm3046_vm0, %v3045_v0 }
 0x501   : > { %2786 = vmatprep.subr.bf16.mxu0 %v3045_v0 }
 0x52c   : > { %v922_v40 = vpop.f32.mrb[16].mxu1 }
 0x52d   : > { %v2760_v41 = vpop.f32.mrb[17].mxu1 }
 0x52e   : > { %v925_v42 = vpop.f32.mrb[18].mxu1 }
 0x52f   : > { %v2761_v43 = vpop.f32.mrb[19].mxu1 }
 0x534   : > { %v1016_v44 = vpop.f32.mrb[20].mxu1 }
 0x535   : > { %v2772_v46 = vpop.f32.mrb[21].mxu1 }
 0x536   : > { %v1019_v47 = vpop.f32.mrb[22].mxu1 }
 0x537   : > { %v1023_v48 = vpack.c.bf16 %v1019_v47, %v1016_v44  ;;  %v2773_v49 = vpop.f32.mrb[23].mxu1  ;;  %v1213_v44 = vsub.s32 5, %v3150_v7 }
 0x539   : > { %2777 = vmatmul.mubr.msk.bf16.vlgmr.msra.gmra.mrb[16].mxu0 %vm491_vm2, %v1023_v48 }
 0x53a   : > { %2787 = vmatpush3.bf16.msra.mxu0 %v1125_v50  ;;  %2788 = vmatprep.mubr.msk.bf16.mxu0 %vm3046_vm0, %v3045_v0  ;;  %v1214_v50 = vrot.slane %v3160_v9, %v1213_v44 }
 0x53b   : > { %2800 = vmatprep.subr.bf16.mxu0 %v3045_v0 }
 0x53c   : > { %v1113_v51 = vpop.f32.mrb[24].mxu1 }
 0x53d   : > { %v2784_v52 = vpop.f32.mrb[25].mxu1 }
 0x53e   : > { %v1116_v53 = vpop.f32.mrb[26].mxu1 }
 0x53f   : > { %v1120_v54 = vpack.c.bf16 %v1116_v53, %v1113_v51  ;;  %v2785_v55 = vpop.f32.mrb[27].mxu1 }
 0x540   : > { %v2937_v55 = vld [vmem:[%s3141_s17] sm:$0xff]  }
 0x541   : > { %2789 = vmatmul.mubr.msk.bf16.vlgmr.msra.gmra.mrb[20].mxu0 %vm491_vm2, %v1120_v54 }
 0x542   : > { %2808 = vmatprep.mubr.msk.bf16.mxu0 %vm3046_vm0, %v3045_v0  ;;  %2801 = vmatpush3.bf16.msra.mxu0 %v2937_v55 }
 0x543   : > { %2802 = vmatprep.subr.bf16.mxu0 %v3045_v0 }
 0x5d2   : > { %v969_v56 = vpop.f32.mrb[12].mxu0 }
 0x5d3   : > { %v970_v57 = vadd.f32 %v969_v56, %v922_v40  ;;  %v2766_v58 = vpop.f32.mrb[13].mxu0  ;;  %v2938_v56 = vld [vmem:[%s3141_s17 + $0x8] sm:$0xff]  }
 0x5d4   : > { %v972_v59 = vpop.f32.mrb[14].mxu0  ;;  %2803 = vmatpush3.bf16.msra.mxu0 %v2938_v56  ;;  %v2940_v58 = vld [vmem:[%s3141_s17 + $0x18] sm:$0xff]  }
 0x5d5   : > { %v973_v60 = vadd.f32 %v972_v59, %v925_v42  ;;  %v2767_v61 = vpop.f32.mrb[15].mxu0  ;;  %v1207_v42 = vsub.s32 4, %v3150_v7  ;;  %2804 = vmatprep.subr.bf16.mxu0 %v3045_v0  ;;  %v1220_v59 = vsub.s32 2, %v3150_v7 }
 0x5d7   : > { %v1208_v43 = vrot.slane %v3160_v9, %v1207_v42 }
 0x60c   : > { %v1064_v62 = vpop.f32.mrb[16].mxu0 }
 0x60d   : > { %v1071_v63 = vadd.f32 %v1064_v62, %v970_v57  ;;  %v2778_v1 = vpop.f32.mrb[17].mxu0  ;;  %v2939_v57 = vld [vmem:[%s3141_s17 + $0x10] sm:$0xff]  }
 0x60e   : > { %v1067_v2 = vpop.f32.mrb[18].mxu0  ;;  %2805 = vmatpush3.bf16.msra.mxu0 %v2939_v57 }
 0x60f   : > { %v1072_v17 = vadd.f32 %v1067_v2, %v973_v60  ;;  %v2779_v5 = vpop.f32.mrb[19].mxu0  ;;  %2806 = vmatprep.subr.bf16.mxu0 %v3045_v0  ;;  %v1221_v60 = vrot.slane %v3160_v9, %v1220_v59 }
 0x612   : > { %2807 = vmatpush3.bf16.msra.mxu0 %v2940_v58 }
 0x613   : > { %2826 = vmatprep.subr.bf16.mxu0 %v3045_v0 }
 0x614   : > { %v1161_v11 = vpop.f32.mrb[20].mxu0 }
 0x615   : > { %v1168_v12 = vadd.f32 %v1161_v11, %v1071_v63  ;;  %v2790_v13 = vpop.f32.mrb[21].mxu0 }
 0x616   : > { %v1164_v14 = vpop.f32.mrb[22].mxu0 }
 0x617   : > { %v1174_v15 = vadd.f32 %v1173_v10, %v1168_v12  ;;  %v1169_v16 = vadd.f32 %v1164_v14, %v1072_v17  ;;  %v2791_v18 = vpop.f32.mrb[23].mxu0 }
 0x619   : > { %v1175_v19 = vadd.f32 %v1173_v10, %v1169_v16  ;;  %v1176_v20 = vadd.f32 %v1174_v15, %v3134_v3 }
 0x61b   : > { %v1178_v21 = vsel %vm442_vm1, %v1176_v20, 0.0  ;;  %v1177_v22 = vadd.f32 %v1175_v19, %v3136_v4  ;;  %v2935_v4 = vld [vmem:[%s3131_s14] sm:$0xff]  }
 0x61c   : > { %1179 = vadd.xlane.f32.xlu1 %v1178_v21  ;;  %2793 = vmatpush3.bf16.msra.mxu1 %v2935_v4 }
 0x61d   : > { %v1181_v23 = vsel %vm442_vm1, %v1177_v22, 0.0  ;;  %2794 = vmatprep.subr.bf16.mxu1 %v3045_v0 }
 0x61e   : > { %1182 = vadd.xlane.f32.xlu0 %v1181_v23 }
 0x620   : > { %2795 = vmatpush3.bf16.msra.mxu1 %v2936_v35 }
 0x621   : > { %2812 = vmatprep.subr.bf16.mxu1 %v3045_v0 }
 0x6a9   : > { %v1180_v24 = vpop.xlane.xlu1 %1179 }
 0x6aa   : > { %v1185_v25 = vmul.f32 0.03125, %v1180_v24 }
 0x6ab   : > { %v1183_v26 = vpop.xlane.xlu0 %1182 }
 0x6ac   : > { %v1187_v27 = vsub.f32 %v1176_v20, %v1185_v25  ;;  %v1186_v28 = vmul.f32 0.03125, %v1183_v26 }
 0x6ae   : > { %v1188_v30 = vsub.f32 %v1177_v22, %v1186_v28  ;;  %v1189_v31 = vmul.f32 %v1187_v27, %v1187_v27 }
 0x6b0   : > { %v1191_v33 = vsel %vm442_vm1, %v1189_v31, 0.0  ;;  %v1190_v3 = vmul.f32 %v1188_v30, %v1188_v30 }
 0x6b1   : > { %1192 = vadd.xlane.f32.xlu1 %v1191_v33 }
 0x6b2   : > { %v1194_v34 = vsel %vm442_vm1, %v1190_v3, 0.0 }
 0x6b3   : > { %1195 = vadd.xlane.f32.xlu0 %v1194_v34 }
 0x73e   : > { %v1193_v36 = vpop.xlane.xlu1 %1192 }
 0x73f   : > { %v1197_v37 = vmul.f32 0.03125, %v1193_v36 }
 0x740   : > { %v1196_v38 = vpop.xlane.xlu0 %1195 }
 0x741   : > { %v1199_v39 = vadd.f32 1e-12, %v1197_v37  ;;  %v1198_v40 = vmul.f32 0.03125, %v1196_v38 }
 0x743   : > { %2981 = vrsqrt.f32 %v1199_v39  ;;  %v1200_v41 = vadd.f32 1e-12, %v1198_v40 }
 0x745   : > { %2983 = vrsqrt.f32 %v1200_v41 }
 0x74d   : > { %v2982_v45 = vpop.eup %2981 }
 0x74e   : > { %v1203_v46 = vmul.f32 %v2982_v45, %v1187_v27 }
 0x74f   : > { %v2984_v47 = vpop.eup %2983 }
 0x750   : > { %v1209_v48 = vmul.f32 %v1208_v43, %v1203_v46  ;;  %v1204_v49 = vmul.f32 %v2984_v47, %v1188_v30  ;;  %v1299_v30 = vsub.s32 3, %v3150_v7 }
 0x752   : > { %v1210_v51 = vmul.f32 %v1208_v43, %v1204_v49  ;;  %v1215_v52 = vadd.f32 %v1214_v50, %v1209_v48  ;;  %v1300_v31 = vrot.slane %v3160_v9, %v1299_v30 }
 0x754   : > { %v1216_v53 = vadd.f32 %v1214_v50, %v1210_v51 }
 0x756   : > { %v1217_v54 = vpack.c.bf16 %v1216_v53, %v1215_v52 }
 0x758   : > { %2797 = vmatmul.mubr.msk.bf16.vlgmr.msra.gmra.mrb[28].mxu1 %vm442_vm1, %v1217_v54  ;;  %v2942_v54 = vld [vmem:[%s3118_s29 + $0x18] sm:$0xff]  }
 0x759   : > { %2816 = vmatprep.mubr.msk.bf16.mxu1 %vm3046_vm0, %v3045_v0 }
 0x82b   : > { %v1271_v61 = vpop.f32.mrb[28].mxu1 }
 0x82c   : > { %v1272_v62 = vadd.f32 %v1271_v61, %v1221_v60  ;;  %v2798_v63 = vpop.f32.mrb[29].mxu1 }
 0x82d   : > { %v1274_v1 = vpop.f32.mrb[30].mxu1 }
 0x82e   : > { %v1278_v2 = vmul.f32 %v1272_v62, %v1272_v62  ;;  %v1275_v17 = vadd.f32 %v1274_v1, %v1221_v60  ;;  %v2799_v5 = vpop.f32.mrb[31].mxu1  ;;  %v1406_v1 = vsub.s32 7, %v3150_v7 }
 0x830   : > { %v1280_v10 = vmul.f32 %v1278_v2, %v1272_v62  ;;  %v1279_v11 = vmul.f32 %v1275_v17, %v1275_v17 }
 0x832   : > { %v1282_v12 = vmul.f32 0.044715, %v1280_v10  ;;  %v1281_v13 = vmul.f32 %v1279_v11, %v1275_v17 }
 0x834   : > { %v1284_v14 = vadd.f32 %v1282_v12, %v1272_v62  ;;  %v1283_v15 = vmul.f32 0.044715, %v1281_v13  ;;  %v1407_v12 = vrot.slane %v3160_v9, %v1406_v1 }
 0x836   : > { %v1286_v16 = vmul.f32 0.7978846, %v1284_v14  ;;  %v1285_v18 = vadd.f32 %v1283_v15, %v1275_v17 }
 0x838   : > { %2985 = vtanh.f32 %v1286_v16  ;;  %v1287_v19 = vmul.f32 0.7978846, %v1285_v18  ;;  %v3358_v18 = vld [vmem:[%s3156_s20 + $0x8] sm:$0xff] }
 0x83a   : > { %2987 = vtanh.f32 %v1287_v19  ;;  %v1440_v19 = vrot.slane %v3358_v18, %v428_v8 }
 0x842   : > { %v2986_v20 = vpop.eup %2985 }
 0x843   : > { %v1290_v21 = vadd.f32 1.0, %v2986_v20 }
 0x844   : > { %v2988_v22 = vpop.eup %2987 }
 0x845   : > { %v1292_v23 = vmul.f32 0.5, %v1290_v21  ;;  %v1291_v24 = vadd.f32 1.0, %v2988_v22 }
 0x847   : > { %v1293_v25 = vmul.f32 0.5, %v1291_v24  ;;  %v1294_v26 = vmul.f32 %v1292_v23, %v1272_v62  ;;  %v1400_v62 = vsub.s32 6, %v3150_v7 }
 0x849   : > { %v1295_v27 = vmul.f32 %v1293_v25, %v1275_v17  ;;  %v1401_v63 = vrot.slane %v3160_v9, %v1400_v62 }
 0x84b   : > { %v1296_v28 = vpack.c.bf16 %v1295_v27, %v1294_v26 }
 0x84d   : > { %2809 = vmatmul.mubr.msk.bf16.vlgmr.msra.gmra.mrb[24].mxu0 %vm1325_vm5, %v1296_v28 }
 0x84e   : > { %2828 = vmatprep.mubr.msk.bf16.mxu0 %vm3046_vm0, %v3045_v0 }
 0x920   : > { %v1363_v33 = vpop.f32.mrb[24].mxu0 }
 0x921   : > { %v1364_v3 = vadd.f32 %v1363_v33, %v1300_v31  ;;  %v2810_v34 = vpop.f32.mrb[25].mxu0 }
 0x922   : > { %v1366_v4 = vpop.f32.mrb[26].mxu0 }
 0x923   : > { %v1367_v35 = vadd.f32 %v1366_v4, %v1300_v31  ;;  %v2811_v36 = vpop.f32.mrb[27].mxu0  ;;  %v1370_v37 = vadd.f32 %v1364_v3, %v1215_v52 }
 0x925   : > { %v1372_v38 = vsel %vm442_vm1, %v1370_v37, 0.0  ;;  %v1371_v39 = vadd.f32 %v1367_v35, %v1216_v53  ;;  %v2941_v53 = vld [vmem:[%s3118_s29 + $0x10] sm:$0xff]  }
 0x926   : > { %1373 = vadd.xlane.f32.xlu1 %v1372_v38  ;;  %2813 = vmatpush3.bf16.msra.mxu1 %v2941_v53 }
 0x927   : > { %v1375_v40 = vsel %vm442_vm1, %v1371_v39, 0.0  ;;  %2814 = vmatprep.subr.bf16.mxu1 %v3045_v0 }
 0x928   : > { %1376 = vadd.xlane.f32.xlu0 %v1375_v40 }
 0x92a   : > { %2815 = vmatpush3.bf16.msra.mxu1 %v2942_v54 }
 0x92b   : > { %2820 = vmatprep.subr.bf16.mxu1 %v3045_v0 }
 0x9b3   : > { %v1374_v41 = vpop.xlane.xlu1 %1373 }
 0x9b4   : > { %v1378_v43 = vmul.f32 0.03125, %v1374_v41 }
 0x9b5   : > { %v1377_v45 = vpop.xlane.xlu0 %1376 }
 0x9b6   : > { %v1380_v46 = vsub.f32 %v1370_v37, %v1378_v43  ;;  %v1379_v47 = vmul.f32 0.03125, %v1377_v45 }
 0x9b8   : > { %v1381_v48 = vsub.f32 %v1371_v39, %v1379_v47  ;;  %v1382_v49 = vmul.f32 %v1380_v46, %v1380_v46 }
 0x9ba   : > { %v1384_v50 = vsel %vm442_vm1, %v1382_v49, 0.0  ;;  %v1383_v51 = vmul.f32 %v1381_v48, %v1381_v48 }
 0x9bb   : > { %1385 = vadd.xlane.f32.xlu1 %v1384_v50 }
 0x9bc   : > { %v1387_v52 = vsel %vm442_vm1, %v1383_v51, 0.0 }
 0x9bd   : > { %1388 = vadd.xlane.f32.xlu0 %v1387_v52 }
 0xa48   : > { %v1386_v55 = vpop.xlane.xlu1 %1385 }
 0xa49   : > { %v1390_v56 = vmul.f32 0.03125, %v1386_v55 }
 0xa4a   : > { %v1389_v57 = vpop.xlane.xlu0 %1388 }
 0xa4b   : > { %v1392_v58 = vadd.f32 1e-12, %v1390_v56  ;;  %v1391_v60 = vmul.f32 0.03125, %v1389_v57 }
 0xa4d   : > { %2989 = vrsqrt.f32 %v1392_v58  ;;  %v1393_v61 = vadd.f32 1e-12, %v1391_v60 }
 0xa4f   : > { %2991 = vrsqrt.f32 %v1393_v61 }
 0xa57   : > { %v2990_v2 = vpop.eup %2989 }
 0xa58   : > { %v1396_v17 = vmul.f32 %v2990_v2, %v1380_v46 }
 0xa59   : > { %v2992_v5 = vpop.eup %2991 }
 0xa5a   : > { %v1402_v10 = vmul.f32 %v1401_v63, %v1396_v17  ;;  %v1397_v11 = vmul.f32 %v2992_v5, %v1381_v48 }
 0xa5c   : > { %v1403_v13 = vmul.f32 %v1401_v63, %v1397_v11  ;;  %v3348_v14 = vadd.f32 %v1407_v12, %v1402_v10 }
 0xa5e   : > { %v3350_v15 = vadd.f32 %v1407_v12, %v1403_v13 }
 0xa60   : > { %v1436_v16 = vpack.c.bf16 %v3350_v15, %v3348_v14 }
 0xa62   : > { %2817 = vmatmul.mubr.msk.bf16.vlgmr.msra.gmra.mrb[32].mxu1 %vm442_vm1, %v1436_v16 }
 0xa63   : > { %2822 = vmatprep.mubr.msk.bf16.mxu1 %vm3046_vm0, %v3045_v0 }
 0xb35   : > { %v1490_v9 = vpop.f32.mrb[32].mxu1 }
 0xb36   : > { %v2818_v20 = vpop.f32.mrb[33].mxu1  ;;  %v1491_v22 = vadd.f32 %v1490_v9, %v1440_v19 }
 0xb37   : > { %v1493_v21 = vpop.f32.mrb[34].mxu1 }
 0xb38   : > { %v1494_v23 = vadd.f32 %v1493_v21, %v1440_v19  ;;  %v2819_v24 = vpop.f32.mrb[35].mxu1 }
 0xb3a   : > { %v3363_v25 = vpack.c.bf16 %v1494_v23, %v1491_v22 }
 0xb3c   : > { %1548 = vrot.lane.b32.xlu0 %v3363_v25, %s3050_s25  ;;  %1550 = vrot.lane.b32.xlu1 %v3363_v25, %s3048_s22 }
 0xb40   : > { %1652 = vrot.lane.b32.xlu0 %v3363_v25, %s3051_s27  ;;  %1499 = vrot.lane.b32.xlu1 %v3363_v25, %s3047_s21 }
 0xb44   : > { %1601 = vrot.lane.b32.xlu1 %v3363_v25, %s3049_s23 }
 0xb48   : > { %1599 = vrot.lane.b32.xlu1 %v3363_v25, %s3052_s28 }
 0xb4c   : > { %1650 = vrot.lane.b32.xlu1 %v3363_v25, %s3053_s30 }
 0xbae   : > { %v1549_v8 = vpop.permute.xlu0 %1548  ;;  %v1551_v26 = vpop.permute.xlu1 %1550 }
 0xbaf   : > { %v1556_v27 = vsel %vm491_vm2, %v1551_v26, 0 }
 0xbb0   : > { %2827 = vmatpush3.bf16.xpose.msra.mxu0 %v1556_v27 }
 0xbb1   : > { %2838 = vmatprep.subr.bf16.mxu0 %v3045_v0 }
 0xbb2   : > { %v1500_v28 = vpop.permute.xlu1 %1499  ;;  %v1653_v33 = vpop.permute.xlu0 %1652 }
 0xbb3   : > { %v1505_v31 = vsel %vm491_vm2, %v1500_v28, 0  ;;  %v1658_v34 = vsel %vm491_vm2, %v1653_v33, 0 }
 0xbb4   : > { %2821 = vmatpush3.bf16.xpose.msra.mxu1 %v1505_v31 }
 0xbb5   : > { %2832 = vmatprep.subr.bf16.mxu1 %v3045_v0 }
 0xbb6   : > { %v1602_v3 = vpop.permute.xlu1 %1601 }
 0xbb7   : > { %2829 = vmatmul.mubr.msk.bf16.vlgmr.msra.gmra.mrb[28].mxu0 %vm491_vm2, %v1549_v8  ;;  %v1607_v35 = vsel %vm491_vm2, %v1602_v3, 0 }
 0xbb8   : > { %2839 = vmatpush3.bf16.xpose.msra.mxu0 %v1658_v34  ;;  %2840 = vmatprep.mubr.msk.bf16.mxu0 %vm3046_vm0, %v3045_v0 }
 0xbb9   : > { %2850 = vmatprep.subr.bf16.mxu0 %v3045_v0 }
 0xbba   : > { %v1600_v4 = vpop.permute.xlu1 %1599 }
 0xbbb   : > { %2823 = vmatmul.mubr.msk.bf16.vlgmr.msra.gmra.mrb[36].mxu1 %vm491_vm2, %v3363_v25 }
 0xbbc   : > { %2833 = vmatpush3.bf16.xpose.msra.mxu1 %v1607_v35  ;;  %2834 = vmatprep.mubr.msk.bf16.mxu1 %vm3046_vm0, %v3045_v0 }
 0xbbd   : > { %2844 = vmatprep.subr.bf16.mxu1 %v3045_v0 }
 0xbbe   : > { %v1651_v36 = vpop.permute.xlu1 %1650 }
 0xbbf   : > { %2841 = vmatmul.mubr.msk.bf16.vlgmr.msra.gmra.mrb[32].mxu0 %vm491_vm2, %v1651_v36 }
 0xbc0   : > { %2852 = vmatprep.mubr.msk.bf16.mxu0 %vm3046_vm0, %v3045_v0 }
 0xbc3   : > { %2835 = vmatmul.mubr.msk.bf16.vlgmr.msra.gmra.mrb[40].mxu1 %vm491_vm2, %v1600_v4 }
 0xbc4   : > { %2846 = vmatprep.mubr.msk.bf16.mxu1 %vm3046_vm0, %v3045_v0 }
 0xc8a   : > { %v1592_v37 = vpop.f32.mrb[28].mxu0 }
 0xc8b   : > { %v1593_v38 = vadd.f32 %v1592_v37, %v3206_v29  ;;  %v2830_v39 = vpop.f32.mrb[29].mxu0 }
 0xc8c   : > { %v1595_v40 = vpop.f32.mrb[30].mxu0 }
 0xc8d   : > { %v1596_v41 = vadd.f32 %v1595_v40, %v3208_v32  ;;  %v2831_v43 = vpop.f32.mrb[31].mxu0  ;;  %v1707_v45 = vsel %vm692_vm3, %v1593_v38, -inf }
 0xc8e   : > { %1708 = vmax.xlane.f32.xlu0 %v1707_v45  ;;  %v1541_v46 = vpop.f32.mrb[36].mxu1 }
 0xc8f   : > { %v3404_v47 = vadd.f32 %v1541_v46, %v3206_v29  ;;  %v2824_v48 = vpop.f32.mrb[37].mxu1  ;;  %v1710_v49 = vsel %vm692_vm3, %v1596_v41, -inf }
 0xc90   : > { %1711 = vmax.xlane.f32.xlu1 %v1710_v49  ;;  %v1544_v50 = vpop.f32.mrb[38].mxu1 }
 0xc91   : > { %v2825_v51 = vpop.f32.mrb[39].mxu1  ;;  %v1545_v53 = vadd.f32 %v1544_v50, %v3208_v32  ;;  %v1701_v55 = vsel %vm692_vm3, %v3404_v47, -inf }
 0xc92   : > { %v1694_v52 = vpop.f32.mrb[32].mxu0 }
 0xc93   : > { %v2842_v54 = vpop.f32.mrb[33].mxu0  ;;  %v1704_v63 = vsel %vm692_vm3, %v1545_v53, -inf  ;;  %v1695_v11 = vadd.f32 %v1694_v52, %v3206_v29 }
 0xc94   : > { %v1697_v56 = vpop.f32.mrb[34].mxu0  ;;  %1702 = vmax.xlane.f32.xlu1 %v1701_v55 }
 0xc95   : > { %v2843_v57 = vpop.f32.mrb[35].mxu0  ;;  %v1698_v13 = vadd.f32 %v1697_v56, %v3208_v32  ;;  %v1719_v16 = vsel %vm692_vm3, %v1695_v11, -inf }
 0xc96   : > { %v1643_v58 = vpop.f32.mrb[40].mxu1 }
 0xc97   : > { %v1644_v60 = vadd.f32 %v1643_v58, %v3206_v29  ;;  %v2836_v61 = vpop.f32.mrb[41].mxu1  ;;  %v1722_v19 = vsel %vm692_vm3, %v1698_v13, -inf }
 0xc98   : > { %1705 = vmax.xlane.f32.xlu1 %v1704_v63  ;;  %v1646_v2 = vpop.f32.mrb[42].mxu1 }
 0xc99   : > { %v2837_v17 = vpop.f32.mrb[43].mxu1  ;;  %v1647_v5 = vadd.f32 %v1646_v2, %v3208_v32  ;;  %v1713_v10 = vsel %vm692_vm3, %v1644_v60, -inf }
 0xc9b   : > { %v1716_v12 = vsel %vm692_vm3, %v1647_v5, -inf }
 0xc9c   : > { %1714 = vmax.xlane.f32.xlu1 %v1713_v10 }
 0xca0   : > { %1717 = vmax.xlane.f32.xlu1 %v1716_v12 }
 0xca4   : > { %1720 = vmax.xlane.f32.xlu1 %v1719_v16 }
 0xca8   : > { %1723 = vmax.xlane.f32.xlu1 %v1722_v19 }
 0xcb9   : > { %1793 = vrot.lane.b32.xlu1 %v3363_v25, %s3055_s13 }
 0xd1b   : > { %v1709_v9 = vpop.xlane.xlu0 %1708 }
 0xd1c   : > { %v1727_v20 = vsub.f32 %v1593_v38, %v1709_v9 }
 0xd1d   : > { %v1712_v21 = vpop.xlane.xlu1 %1711 }
 0xd1e   : > { %v1737_v22 = vmul.f32 1.442695, %v1727_v20  ;;  %v1728_v23 = vsub.f32 %v1596_v41, %v1712_v21  ;;  %v2593_v20 = vld [vmem:[%s3251_s9 + $0x14] sm:$0xf] }
 0xd20   : > { %2993 = vpow2.f32 %v1737_v22  ;;  %v1739_v29 = vmul.f32 1.442695, %v1728_v23 }
 0xd21   : > { %v1703_v24 = vpop.xlane.xlu1 %1702 }
 0xd22   : > { %2995 = vpow2.f32 %v1739_v29  ;;  %v1725_v58 = vsub.f32 %v3404_v47, %v1703_v24  ;;  %v1893_v29 = vsel %vm884_vm4, %v2593_v20, 0  ;;  %v2592_v24 = vld [vmem:[%s3251_s9 + $0x10] sm:$0xf] }
 0xd25   : > { %v1706_v8 = vpop.xlane.xlu1 %1705 }
 0xd26   : > { %v1726_v32 = vsub.f32 %v1545_v53, %v1706_v8  ;;  %v1940_v8 = vsel %vm884_vm4, %v2592_v24, 0 }
 0xd28   : > { %v1735_v26 = vmul.f32 1.442695, %v1726_v32 }
 0xd29   : > { %v1715_v27 = vpop.xlane.xlu1 %1714 }
 0xd2a   : > { %v2994_v28 = vpop.eup %2993  ;;  %2997 = vpow2.f32 %v1735_v26  ;;  %v1729_v31 = vsub.f32 %v1644_v60, %v1715_v27  ;;  %v1733_v60 = vmul.f32 1.442695, %v1725_v58 }
 0xd2b   : > { %v1755_v33 = vsel %vm692_vm3, %v2994_v28, 0.0 }
 0xd2c   : > { %v2996_v3 = vpop.eup %2995  ;;  %v1741_v34 = vmul.f32 1.442695, %v1729_v31  ;;  %1756 = vadd.xlane.f32.xlu0 %v1755_v33 }
 0xd2d   : > { %v1718_v4 = vpop.xlane.xlu1 %1717  ;;  %v1758_v35 = vsel %vm692_vm3, %v2996_v3, 0.0 }
 0xd2e   : > { %2999 = vpow2.f32 %v1741_v34  ;;  %v1730_v36 = vsub.f32 %v1647_v5, %v1718_v4 }
 0xd30   : > { %1759 = vadd.xlane.f32.xlu0 %v1758_v35  ;;  %v1743_v40 = vmul.f32 1.442695, %v1730_v36 }
 0xd31   : > { %v1721_v37 = vpop.xlane.xlu1 %1720 }
 0xd32   : > { %v1731_v38 = vsub.f32 %v1695_v11, %v1721_v37 }
 0xd34   : > { %v2998_v39 = vpop.eup %2997  ;;  %v1745_v41 = vmul.f32 1.442695, %v1731_v38 }
 0xd35   : > { %v1724_v43 = vpop.xlane.xlu1 %1723  ;;  %v1752_v45 = vsel %vm692_vm3, %v2998_v39, 0.0 }
 0xd36   : > { %3001 = vpow2.f32 %v1745_v41  ;;  %v1732_v46 = vsub.f32 %v1698_v13, %v1724_v43  ;;  %1753 = vadd.xlane.f32.xlu1 %v1752_v45 }
 0xd37   : > { %3003 = vpow2.f32 %v1743_v40 }
 0xd38   : > { %v3424_v48 = vpop.eup %2999  ;;  %v1747_v49 = vmul.f32 1.442695, %v1732_v46 }
 0xd39   : > { %v1794_v50 = vpop.permute.xlu1 %1793  ;;  %v1761_v51 = vsel %vm692_vm3, %v3424_v48, 0.0 }
 0xd3a   : > { %1762 = vadd.xlane.f32.xlu1 %v1761_v51  ;;  %2845 = vmatpush3.bf16.msra.mxu1 %v1794_v50  ;;  %3005 = vpow2.f32 %v1747_v49 }
 0xd3b   : > { %2856 = vmatprep.subr.bf16.mxu1 %v3045_v0  ;;  %3007 = vpow2.f32 %v1733_v60 }
 0xd40   : > { %v3429_v52 = vpop.eup %3001 }
 0xd41   : > { %v1767_v53 = vsel %vm692_vm3, %v3429_v52, 0.0  ;;  %v3433_v54 = vpop.eup %3003 }
 0xd42   : > { %1768 = vadd.xlane.f32.xlu1 %v1767_v53  ;;  %v1764_v55 = vsel %vm692_vm3, %v3433_v54, 0.0 }
 0xd44   : > { %v3437_v56 = vpop.eup %3005 }
 0xd45   : > { %v1770_v57 = vsel %vm692_vm3, %v3437_v56, 0.0  ;;  %v3008_v61 = vpop.eup %3007 }
 0xd46   : > { %1841 = vrot.lane.b32.xlu0 %v3363_v25, %s3054_s12  ;;  %1765 = vadd.xlane.f32.xlu1 %v1764_v55  ;;  %v1749_v63 = vsel %vm692_vm3, %v3008_v61, 0.0 }
 0xd4a   : > { %1771 = vadd.xlane.f32.xlu1 %v1770_v57 }
 0xd5b   : > { %2080 = vrot.lane.b32.xlu1 %v3363_v25, %s3057_s16 }
 0xd65   : > { %1750 = vadd.xlane.f32.xlu0 %v1749_v63 }
 0xd7b   : > { %1983 = vrot.lane.b32.xlu0 %v3363_v25, %s3056_s15 }
 0xdb9   : > { %v1757_v2 = vpop.xlane.xlu0 %1756 }
 0xdba   : > { %3009 = vrcp.f32 %v1757_v2  ;;  %v2595_v2 = vld [vmem:[%s3251_s9 + $0x1c] sm:$0xf] }
 0xdbd   : > { %v1760_v17 = vpop.xlane.xlu0 %1759 }
 0xdbe   : > { %3011 = vrcp.f32 %v1760_v17 }
 0xdc1   : > { %v1842_v5 = vpop.permute.xlu0 %1841 }
 0xdc2   : > { %2851 = vmatpush3.bf16.msra.mxu0 %v1842_v5 }
 0xdc3   : > { %2862 = vmatprep.subr.bf16.mxu0 %v3045_v0  ;;  %v1754_v25 = vpop.xlane.xlu1 %1753 }
 0xdc4   : > { %v3010_v47 = vpop.eup %3009  ;;  %3013 = vrcp.f32 %v1754_v25 }
 0xdc5   : > { %v1778_v11 = vmul.f32 %v3010_v47, %v2994_v28 }
 0xdc7   : > { %v1763_v32 = vpop.xlane.xlu1 %1762 }
 0xdc8   : > { %v3012_v10 = vpop.eup %3011 }
 0xdc9   : > { %v1780_v12 = vmul.f32 %v3012_v10, %v2996_v3 }
 0xdcb   : > { %v1790_v13 = vpack.c.bf16 %v1780_v12, %v1778_v11  ;;  %v2132_v11 = vsel %vm884_vm4, %v2595_v2, 0  ;;  %v2214_v2 = vrot.slane %v3358_v18, %v1207_v42  ;;  %v2946_v42 = vld [vmem:[%s3141_s17 + $0x28] sm:$0xff]  }
 0xdcd   : > { %2853 = vmatmul.mubr.msk.bf16.vlgmr.msra.gmra.mrb[36].mxu0 %vm692_vm3, %v1790_v13 }
 0xdce   : > { %2864 = vmatprep.mubr.msk.bf16.mxu0 %vm3046_vm0, %v3045_v0  ;;  %v3014_v19 = vpop.eup %3013  ;;  %2863 = vmatpush3.bf16.msra.mxu0 %v1940_v8 }
 0xdcf   : > { %v1776_v21 = vmul.f32 %v3014_v19, %v2998_v39  ;;  %2874 = vmatprep.subr.bf16.mxu0 %v3045_v0  ;;  %v1769_v26 = vpop.xlane.xlu1 %1768 }
 0xdd3   : > { %v1766_v27 = vpop.xlane.xlu1 %1765 }
 0xdd7   : > { %v1772_v28 = vpop.xlane.xlu1 %1771 }
 0xddb   : > { %v2081_v43 = vpop.permute.xlu1 %2080 }
 0xdf2   : > { %v1751_v16 = vpop.xlane.xlu0 %1750 }
 0xdf3   : > { %3015 = vrcp.f32 %v1751_v16 }
 0xdf4   : > { %3017 = vrcp.f32 %v1766_v27 }
 0xdf5   : > { %3019 = vrcp.f32 %v1763_v32 }
 0xdf6   : > { %3021 = vrcp.f32 %v1772_v28  ;;  %v1984_v36 = vpop.permute.xlu0 %1983 }
 0xdf7   : > { %3023 = vrcp.f32 %v1769_v26 }
 0xdfd   : > { %v3016_v9 = vpop.eup %3015 }
 0xdfe   : > { %v1774_v22 = vmul.f32 %v3016_v9, %v3008_v61  ;;  %v3018_v35 = vpop.eup %3017 }
 0xdff   : > { %v3020_v37 = vpop.eup %3019  ;;  %v1784_v38 = vmul.f32 %v3018_v35, %v3433_v54 }
 0xe00   : > { %v1789_v23 = vpack.c.bf16 %v1776_v21, %v1774_v22  ;;  %v1782_v39 = vmul.f32 %v3020_v37, %v3424_v48  ;;  %v3022_v41 = vpop.eup %3021 }
 0xe01   : > { %v3024_v45 = vpop.eup %3023  ;;  %v1788_v46 = vmul.f32 %v3022_v41, %v3437_v56  ;;  %v2594_v56 = vld [vmem:[%s3251_s9 + $0x18] sm:$0xf] }
 0xe02   : > { %2847 = vmatmul.mubr.msk.bf16.vlgmr.msra.gmra.mrb[44].mxu1 %vm692_vm3, %v1789_v23  ;;  %v1791_v40 = vpack.c.bf16 %v1784_v38, %v1782_v39  ;;  %v1786_v49 = vmul.f32 %v3024_v45, %v3429_v52  ;;  %v2035_v52 = vsel %vm884_vm4, %v2594_v56, 0 }
 0xe03   : > { %2857 = vmatpush3.bf16.msra.mxu1 %v1893_v29  ;;  %2858 = vmatprep.mubr.msk.bf16.mxu1 %vm3046_vm0, %v3045_v0 }
 0xe04   : > { %2868 = vmatprep.subr.bf16.mxu1 %v3045_v0  ;;  %v1792_v50 = vpack.c.bf16 %v1788_v46, %v1786_v49 }
 0xea0   : > { %v1881_v31 = vpop.f32.mrb[36].mxu0 }
 0xea1   : > { %v2854_v33 = vpop.f32.mrb[37].mxu0 }
 0xea2   : > { %v1884_v3 = vpop.f32.mrb[38].mxu0 }
 0xea3   : > { %v1888_v34 = vpack.c.bf16 %v1884_v3, %v1881_v31  ;;  %v2855_v4 = vpop.f32.mrb[39].mxu0  ;;  %v2180_v31 = vrot.slane %v3358_v18, %v1172_v6 }
 0xea5   : > { %2859 = vmatmul.mubr.msk.bf16.vlgmr.msra.gmra.mrb[48].mxu1 %vm491_vm2, %v1888_v34 }
 0xea6   : > { %2869 = vmatpush3.bf16.msra.mxu1 %v1984_v36  ;;  %2870 = vmatprep.mubr.msk.bf16.mxu1 %vm3046_vm0, %v3045_v0 }
 0xea7   : > { %2880 = vmatprep.subr.bf16.mxu1 %v3045_v0 }
 0xead   : > { %2871 = vmatmul.mubr.msk.bf16.vlgmr.msra.gmra.mrb[52].mxu1 %vm692_vm3, %v1791_v40 }
 0xeae   : > { %2881 = vmatpush3.bf16.msra.mxu1 %v2081_v43  ;;  %2882 = vmatprep.mubr.msk.bf16.mxu1 %vm3046_vm0, %v3045_v0 }
 0xeaf   : > { %2892 = vmatprep.subr.bf16.mxu1 %v3045_v0 }
 0xeb5   : > { %2883 = vmatmul.mubr.msk.bf16.vlgmr.msra.gmra.mrb[56].mxu1 %vm692_vm3, %v1792_v50 }
 0xeb6   : > { %2896 = vmatprep.mubr.msk.bf16.mxu1 %vm3046_vm0, %v3045_v0 }
 0xed5   : > { %v1833_v48 = vpop.f32.mrb[44].mxu1 }
 0xed6   : > { %v2848_v51 = vpop.f32.mrb[45].mxu1 }
 0xed7   : > { %v1836_v53 = vpop.f32.mrb[46].mxu1 }
 0xed8   : > { %v1840_v54 = vpack.c.bf16 %v1836_v53, %v1833_v48  ;;  %v2849_v55 = vpop.f32.mrb[47].mxu1 }
 0xed9   : > { %v2944_v55 = vld [vmem:[%s3131_s14 + $0x18] sm:$0xff]  }
 0xeda   : > { %2865 = vmatmul.mubr.msk.bf16.vlgmr.msra.gmra.mrb[40].mxu0 %vm491_vm2, %v1840_v54 }
 0xedb   : > { %2876 = vmatprep.mubr.msk.bf16.mxu0 %vm3046_vm0, %v3045_v0  ;;  %2875 = vmatpush3.bf16.msra.mxu0 %v2035_v52 }
 0xedc   : > { %2886 = vmatprep.subr.bf16.mxu0 %v3045_v0 }
 0xf78   : > { %v1929_v57 = vpop.f32.mrb[48].mxu1 }
 0xf79   : > { %v2860_v58 = vpop.f32.mrb[49].mxu1 }
 0xf7a   : > { %v1932_v60 = vpop.f32.mrb[50].mxu1 }
 0xf7b   : > { %v2861_v61 = vpop.f32.mrb[51].mxu1 }
 0xf80   : > { %v2023_v63 = vpop.f32.mrb[52].mxu1 }
 0xf81   : > { %v2872_v17 = vpop.f32.mrb[53].mxu1 }
 0xf82   : > { %v2026_v5 = vpop.f32.mrb[54].mxu1 }
 0xf83   : > { %v2030_v47 = vpack.c.bf16 %v2026_v5, %v2023_v63  ;;  %v2873_v10 = vpop.f32.mrb[55].mxu1 }
 0xf85   : > { %2877 = vmatmul.mubr.msk.bf16.vlgmr.msra.gmra.mrb[44].mxu0 %vm491_vm2, %v2030_v47 }
 0xf86   : > { %2887 = vmatpush3.bf16.msra.mxu0 %v2132_v11  ;;  %2888 = vmatprep.mubr.msk.bf16.mxu0 %vm3046_vm0, %v3045_v0  ;;  %v2220_v11 = vrot.slane %v3358_v18, %v1213_v44  ;;  %v2227_v44 = vrot.slane %v3358_v18, %v1220_v59 }
 0xf87   : > { %2900 = vmatprep.subr.bf16.mxu0 %v3045_v0 }
 0xf88   : > { %v2120_v12 = vpop.f32.mrb[56].mxu1 }
 0xf89   : > { %v2884_v13 = vpop.f32.mrb[57].mxu1 }
 0xf8a   : > { %v2123_v25 = vpop.f32.mrb[58].mxu1 }
 0xf8b   : > { %v2127_v16 = vpack.c.bf16 %v2123_v25, %v2120_v12  ;;  %v2885_v19 = vpop.f32.mrb[59].mxu1 }
 0xf8c   : > { %v2945_v19 = vld [vmem:[%s3141_s17 + $0x20] sm:$0xff]  }
 0xf8d   : > { %2889 = vmatmul.mubr.msk.bf16.vlgmr.msra.gmra.mrb[48].mxu0 %vm491_vm2, %v2127_v16 }
 0xf8e   : > { %2908 = vmatprep.mubr.msk.bf16.mxu0 %vm3046_vm0, %v3045_v0  ;;  %2901 = vmatpush3.bf16.msra.mxu0 %v2945_v19 }
 0xf8f   : > { %2902 = vmatprep.subr.bf16.mxu0 %v3045_v0 }
 0xf92   : > { %2903 = vmatpush3.bf16.msra.mxu0 %v2946_v42 }
 0xf93   : > { %2904 = vmatprep.subr.bf16.mxu0 %v3045_v0 }
 0xfad   : > { %v1976_v9 = vpop.f32.mrb[40].mxu0 }
 0xfae   : > { %v1977_v20 = vadd.f32 %v1976_v9, %v1929_v57  ;;  %v2866_v21 = vpop.f32.mrb[41].mxu0  ;;  %v2947_v9 = vld [vmem:[%s3141_s17 + $0x30] sm:$0xff]  }
 0xfaf   : > { %v1979_v22 = vpop.f32.mrb[42].mxu0  ;;  %2905 = vmatpush3.bf16.msra.mxu0 %v2947_v9 }
 0xfb0   : > { %v1980_v23 = vadd.f32 %v1979_v22, %v1932_v60  ;;  %v2867_v29 = vpop.f32.mrb[43].mxu0  ;;  %2906 = vmatprep.subr.bf16.mxu0 %v3045_v0 }
0x1058   : > { %v2071_v24 = vpop.f32.mrb[44].mxu0 }
0x1059   : > { %v2078_v8 = vadd.f32 %v2071_v24, %v1977_v20  ;;  %v2878_v32 = vpop.f32.mrb[45].mxu0  ;;  %v2948_v20 = vld [vmem:[%s3141_s17 + $0x38] sm:$0xff]  }
0x105a   : > { %v2074_v26 = vpop.f32.mrb[46].mxu0  ;;  %2907 = vmatpush3.bf16.msra.mxu0 %v2948_v20 }
0x105b   : > { %v2079_v27 = vadd.f32 %v2074_v26, %v1980_v23  ;;  %v2879_v28 = vpop.f32.mrb[47].mxu0 }
0x1060   : > { %v2168_v33 = vpop.f32.mrb[48].mxu0 }
0x1061   : > { %v2175_v3 = vadd.f32 %v2168_v33, %v2078_v8  ;;  %v2890_v34 = vpop.f32.mrb[49].mxu0 }
0x1062   : > { %v2171_v4 = vpop.f32.mrb[50].mxu0 }
0x1063   : > { %v2181_v35 = vadd.f32 %v2180_v31, %v2175_v3  ;;  %v2176_v36 = vadd.f32 %v2171_v4, %v2079_v27  ;;  %v2891_v37 = vpop.f32.mrb[51].mxu0 }
0x1065   : > { %v2182_v38 = vadd.f32 %v2180_v31, %v2176_v36  ;;  %v2183_v39 = vadd.f32 %v2181_v35, %v3348_v14 }
0x1067   : > { %v2185_v40 = vsel %vm442_vm1, %v2183_v39, 0.0  ;;  %v2184_v41 = vadd.f32 %v2182_v38, %v3350_v15  ;;  %v2943_v15 = vld [vmem:[%s3131_s14 + $0x10] sm:$0xff]   ;;  %s398_s14 = scalar_lea.vmem %s3551_s7, %s3121_s8 }
0x1068   : > { %2186 = vadd.xlane.f32.xlu1 %v2185_v40  ;;  %2893 = vmatpush3.bf16.msra.mxu1 %v2943_v15 }
0x1069   : > { %v2188_v43 = vsel %vm442_vm1, %v2184_v41, 0.0  ;;  %2894 = vmatprep.subr.bf16.mxu1 %v3045_v0 }
0x106a   : > { %2189 = vadd.xlane.f32.xlu0 %v2188_v43 }
0x106c   : > { %2895 = vmatpush3.bf16.msra.mxu1 %v2944_v55 }
0x10f5   : > { %v2187_v6 = vpop.xlane.xlu1 %2186 }
0x10f6   : > { %v2191_v45 = vmul.f32 0.03125, %v2187_v6  ;;  %v2306_v6 = vrot.slane %v3358_v18, %v1299_v30 }
0x10f7   : > { %v2190_v46 = vpop.xlane.xlu0 %2189 }
0x10f8   : > { %v2193_v49 = vsub.f32 %v2183_v39, %v2191_v45  ;;  %v2192_v50 = vmul.f32 0.03125, %v2190_v46 }
0x10fa   : > { %v2194_v48 = vsub.f32 %v2184_v41, %v2192_v50  ;;  %v2195_v51 = vmul.f32 %v2193_v49, %v2193_v49 }
0x10fc   : > { %v2197_v53 = vsel %vm442_vm1, %v2195_v51, 0.0  ;;  %v2196_v14 = vmul.f32 %v2194_v48, %v2194_v48 }
0x10fd   : > { %2198 = vadd.xlane.f32.xlu1 %v2197_v53 }
0x10fe   : > { %v2200_v54 = vsel %vm442_vm1, %v2196_v14, 0.0 }
0x1101   : > { %2201 = vadd.xlane.f32.xlu1 %v2200_v54 }
0x118a   : > { %v2199_v56 = vpop.xlane.xlu1 %2198 }
0x118b   : > { %v2203_v52 = vmul.f32 0.03125, %v2199_v56 }
0x118d   : > { %v2205_v57 = vadd.f32 1e-12, %v2203_v52 }
0x118e   : > { %v2202_v58 = vpop.xlane.xlu1 %2201 }
0x118f   : > { %3025 = vrsqrt.f32 %v2205_v57  ;;  %v2204_v60 = vmul.f32 0.03125, %v2202_v58 }
0x1191   : > { %v2206_v61 = vadd.f32 1e-12, %v2204_v60 }
0x1193   : > { %3027 = vrsqrt.f32 %v2206_v61 }
0x1199   : > { %v3026_v63 = vpop.eup %3025 }
0x119a   : > { %v2209_v17 = vmul.f32 %v3026_v63, %v2193_v49 }
0x119c   : > { %v2215_v47 = vmul.f32 %v2214_v2, %v2209_v17 }
0x119d   : > { %v3028_v5 = vpop.eup %3027 }
0x119e   : > { %v2210_v10 = vmul.f32 %v3028_v5, %v2194_v48  ;;  %v2221_v13 = vadd.f32 %v2220_v11, %v2215_v47 }
0x11a0   : > { %v2216_v12 = vmul.f32 %v2214_v2, %v2210_v10 }
0x11a2   : > { %v2222_v25 = vadd.f32 %v2220_v11, %v2216_v12 }
0x11a4   : > { %v2223_v16 = vpack.c.bf16 %v2222_v25, %v2221_v13 }
0x11a6   : > { %2897 = vmatmul.mubr.msk.bf16.vlgmr.msra.gmra.mrb[60].mxu1 %vm442_vm1, %v2223_v16  ;;  %v2412_v16 = vrot.slane %v3358_v18, %v1406_v1 }
0x1279   : > { %v2277_v21 = vpop.f32.mrb[60].mxu1 }
0x127a   : > { %v2278_v22 = vadd.f32 %v2277_v21, %v2227_v44  ;;  %v2898_v23 = vpop.f32.mrb[61].mxu1 }
0x127b   : > { %v2280_v29 = vpop.f32.mrb[62].mxu1 }
0x127c   : > { %v2284_v24 = vmul.f32 %v2278_v22, %v2278_v22  ;;  %v2281_v8 = vadd.f32 %v2280_v29, %v2227_v44  ;;  %v2899_v32 = vpop.f32.mrb[63].mxu1 }
0x127e   : > { %v2286_v26 = vmul.f32 %v2284_v24, %v2278_v22  ;;  %v2285_v27 = vmul.f32 %v2281_v8, %v2281_v8 }
0x1280   : > { %v2288_v28 = vmul.f32 0.044715, %v2286_v26  ;;  %v2287_v31 = vmul.f32 %v2285_v27, %v2281_v8 }
0x1282   : > { %v2290_v33 = vadd.f32 %v2288_v28, %v2278_v22  ;;  %v2289_v3 = vmul.f32 0.044715, %v2287_v31 }
0x1284   : > { %v2292_v0 = vmul.f32 0.7978846, %v2290_v33  ;;  %v2291_v34 = vadd.f32 %v2289_v3, %v2281_v8 }
0x1286   : > { %3029 = vtanh.f32 %v2292_v0  ;;  %v2293_v4 = vmul.f32 0.7978846, %v2291_v34 }
0x1288   : > { %3031 = vtanh.f32 %v2293_v4 }
0x1290   : > { %v3030_v35 = vpop.eup %3029 }
0x1291   : > { %v2296_v59 = vadd.f32 1.0, %v3030_v35 }
0x1292   : > { %v3032_v36 = vpop.eup %3031 }
0x1293   : > { %v2298_v37 = vmul.f32 0.5, %v2296_v59  ;;  %v2297_v38 = vadd.f32 1.0, %v3032_v36 }
0x1295   : > { %v2299_v39 = vmul.f32 0.5, %v2297_v38  ;;  %v2300_v40 = vmul.f32 %v2298_v37, %v2278_v22 }
0x1297   : > { %v2301_v41 = vmul.f32 %v2299_v39, %v2281_v8 }
0x1299   : > { %v2302_v43 = vpack.c.bf16 %v2301_v41, %v2300_v40 }
0x129b   : > { %2909 = vmatmul.mubr.msk.bf16.vlgmr.msra.gmra.mrb[52].mxu0 %vm1325_vm5, %v2302_v43 }
0x136e   : > { %v2368_v45 = vpop.f32.mrb[52].mxu0 }
0x136f   : > { %v2369_v46 = vadd.f32 %v2368_v45, %v2306_v6  ;;  %v2910_v49 = vpop.f32.mrb[53].mxu0 }
0x1370   : > { %v2371_v50 = vpop.f32.mrb[54].mxu0 }
0x1371   : > { %v2372_v48 = vadd.f32 %v2371_v50, %v2306_v6  ;;  %v2911_v51 = vpop.f32.mrb[55].mxu0  ;;  %v2375_v53 = vadd.f32 %v2369_v46, %v2221_v13  ;;  %v2406_v13 = vrot.slane %v3358_v18, %v1400_v62 }
0x1373   : > { %v2377_v14 = vsel %vm442_vm1, %v2375_v53, 0.0  ;;  %v2376_v54 = vadd.f32 %v2372_v48, %v2222_v25 }
0x1374   : > { %2378 = vadd.xlane.f32.xlu0 %v2377_v14 }
0x1375   : > { %v2380_v15 = vsel %vm442_vm1, %v2376_v54, 0.0 }
0x1376   : > { %2381 = vadd.xlane.f32.xlu1 %v2380_v15 }
0x1401   : > { %v2379_v55 = vpop.xlane.xlu0 %2378 }
0x1402   : > { %v2383_v56 = vmul.f32 0.03125, %v2379_v55 }
0x1403   : > { %v2382_v52 = vpop.xlane.xlu1 %2381 }
0x1404   : > { %v2385_v57 = vsub.f32 %v2375_v53, %v2383_v56  ;;  %v2384_v58 = vmul.f32 0.03125, %v2382_v52 }
0x1406   : > { %v2386_v30 = vsub.f32 %v2376_v54, %v2384_v58  ;;  %v2387_v60 = vmul.f32 %v2385_v57, %v2385_v57 }
0x1408   : > { %v2389_v61 = vsel %vm442_vm1, %v2387_v60, 0.0  ;;  %v2388_v63 = vmul.f32 %v2386_v30, %v2386_v30 }
0x1409   : > { %2390 = vadd.xlane.f32.xlu0 %v2389_v61 }
0x140a   : > { %v2392_v2 = vsel %vm442_vm1, %v2388_v63, 0.0 }
0x140b   : > { %2393 = vadd.xlane.f32.xlu1 %v2392_v2 }
0x1496   : > { %v2391_v17 = vpop.xlane.xlu0 %2390 }
0x1497   : > { %v2395_v5 = vmul.f32 0.03125, %v2391_v17 }
0x1498   : > { %v2394_v47 = vpop.xlane.xlu1 %2393 }
0x1499   : > { %v2397_v10 = vadd.f32 1e-12, %v2395_v5  ;;  %v2396_v11 = vmul.f32 0.03125, %v2394_v47 }
0x149b   : > { %3033 = vrsqrt.f32 %v2397_v10  ;;  %v2398_v12 = vadd.f32 1e-12, %v2396_v11 }
0x149d   : > { %3035 = vrsqrt.f32 %v2398_v12 }
0x14a5   : > { %v3034_v25 = vpop.eup %3033 }
0x14a6   : > { %v2401_v19 = vmul.f32 %v3034_v25, %v2385_v57 }
0x14a7   : > { %v3036_v42 = vpop.eup %3035 }
0x14a8   : > { %v2407_v9 = vmul.f32 %v2406_v13, %v2401_v19  ;;  %v2402_v20 = vmul.f32 %v3036_v42, %v2386_v30 }
0x14aa   : > { %v2413_v44 = vadd.f32 %v2412_v16, %v2407_v9  ;;  %v2408_v21 = vmul.f32 %v2406_v13, %v2402_v20 }
0x14ac   : > { %2415 = vst.msk [vmem:[%s398_s14] sm:$0xff] %vm442_vm1, %v2413_v44  ;;  %v2414_v22 = vadd.f32 %v2412_v16, %v2408_v21 }
0x14ae   : > { %2416 = vst.msk [vmem:[%s398_s14 + $0x8] sm:$0xff] %vm442_vm1, %v2414_v22 }
0x14af PF: > { %s17_s24 = sadd.s32 1, %s3043_s24  }
0x14b0   : > { %p14_p4 = scmp.ge.s32.totalorder %s17_s24, 4  }
0x14b2   :  { %16 = sbr.rel (!%p14_p4) target bundleno = 1 (0x1), region = 101 }

</bundles_post_ra>
